<compile_context>
chip_gen: v6e
topology: v6e:2x2x1
jax: 0.10.0
libtpu: 0.0.40
codegen_flags: <defaults>
</compile_context>

<pallas_src>
import math
import functools

import jax
import jax.numpy as jnp
from jax.experimental import pallas as pl
from jax.experimental.pallas import tpu as pltpu

MASK_VALUE = -1e30          # large-but-finite mask constant (avoids -f32max pitfalls)
COSINE_SIM_SCALE = 16.0


# ---------------------------------------------------------------------------
# small helpers used inside kernels (all f32 math)
# ---------------------------------------------------------------------------
def _layernorm(x, g, eps=1e-5):
    # torch LayerNorm used here: (x - mean) * rsqrt(var_biased + eps) * g   (no bias)
    mean = jnp.mean(x, axis=-1, keepdims=True)
    var = jnp.mean(jnp.square(x - mean), axis=-1, keepdims=True)
    return (x - mean) * jax.lax.rsqrt(var + eps) * g


def _l2norm(x, eps=1e-12):
    ss = jnp.sum(x * x, axis=-1, keepdims=True)
    return x * jax.lax.rsqrt(jnp.maximum(ss, eps * eps))


def _rotate_half(t, half):
    # rotate_half(t) = concat(-t[:, half:], t[:, :half]); pure lane shuffle, no MXU.
    return jnp.concatenate([-t[:, half:], t[:, :half]], axis=-1)


# ---------------------------------------------------------------------------
# fused attention + feed-forward body (operates on one batch element)
# ---------------------------------------------------------------------------
def _attn_ff_body(x, g_pre, wq, wkv, nullkv, cos_k, sin_k, cos_q, sin_q,
                  bias_tok, bias_null, wout, g_out, g_ff, w1, w2,
                  *, heads, dim_head, inner, add_residual):
    n = x.shape[0]
    half = dim_head // 2
    sqrt_scale = math.sqrt(COSINE_SIM_SCALE)

    # ---------------- attention ----------------
    h = _layernorm(x, g_pre)                                   # pre-norm (f32)
    hb = h.astype(jnp.bfloat16)
    q = jnp.dot(hb, wq, preferred_element_type=jnp.float32)    # (N, H*dh)
    kv = jnp.dot(hb, wkv, preferred_element_type=jnp.float32)  # (N, 2*dh)
    k = kv[:, :dim_head]
    v = kv[:, dim_head:]

    # rotary pos emb on token keys (null k/v is appended UN-rotated, as in the reference)
    k = k * cos_k + _rotate_half(k, half) * sin_k
    k_s = (_l2norm(k) * sqrt_scale).astype(jnp.bfloat16)       # cosine-sim attention

    nk = nullkv[0:1, :]
    nv = nullkv[1:2, :]
    nk_s = _l2norm(nk) * sqrt_scale                            # stays on the VPU

    # stack heads along rows -> (H*N, dh): every head shares ONE score matmul,
    # ONE p@v matmul and ONE output-projection matmul.
    q_st = jnp.concatenate(
        [q[:, hh * dim_head:(hh + 1) * dim_head] for hh in range(heads)], axis=0)
    q_st = q_st * cos_q + _rotate_half(q_st, half) * sin_q     # rotary, all heads at once
    q_s = _l2norm(q_st) * sqrt_scale

    ctr = (((1,), (1,)), ((), ()))                             # contract last dims (q @ k^T)
    s_tok = jax.lax.dot_general(q_s.astype(jnp.bfloat16), k_s, ctr,
                                preferred_element_type=jnp.float32)   # (H*N, N)
    s_tok = s_tok + bias_tok.astype(jnp.float32)               # rel-pos bias + causal mask (host-folded)

    # null-key score: VPU multiply + lane reduction instead of a 1-wide MXU matmul
    s_null = jnp.sum(q_s * nk_s, axis=-1, keepdims=True) + bias_null.astype(jnp.float32)

    # softmax over token columns + the analytic null column (all f32)
    m = jnp.maximum(jnp.max(s_tok, axis=-1, keepdims=True), s_null)
    p_tok = jnp.exp(s_tok - m)
    p_null = jnp.exp(s_null - m)
    denom = jnp.sum(p_tok, axis=-1, keepdims=True) + p_null

    o_st = jnp.dot(p_tok.astype(jnp.bfloat16), v.astype(jnp.bfloat16),
                   preferred_element_type=jnp.float32) + p_null * nv   # (H*N, dh)
    o_st = o_st * pl.reciprocal(denom, approx=True)

    # merge heads back to (N, H*dh) and do ONE output-projection matmul
    o_cat = jnp.concatenate(
        [o_st[hh * n:(hh + 1) * n, :] for hh in range(heads)], axis=-1)
    attn = jnp.dot(o_cat.astype(jnp.bfloat16), wout, preferred_element_type=jnp.float32)
    y = _layernorm(attn, g_out)                                # to_out LayerNorm
    if add_residual:
        y = y + x

    # ---------------- feed-forward (SwiGLU) ----------------
    h2 = _layernorm(y, g_ff)
    u = jnp.dot(h2.astype(jnp.bfloat16), w1, preferred_element_type=jnp.float32)  # (N, 2*inner)
    a = u[:, :inner]
    gate = u[:, inner:]
    act = a * (gate * jax.nn.sigmoid(gate))
    z = jnp.dot(act.astype(jnp.bfloat16), w2, preferred_element_type=jnp.float32)
    return z + y                                               # FF residual is unconditional


# ---------------------------------------------------------------------------
# Pallas kernels
# ---------------------------------------------------------------------------
def _layer_kernel(x_ref, g_pre_ref, wq_ref, wkv_ref, nullkv_ref, cos_k_ref, sin_k_ref,
                  cos_q_ref, sin_q_ref, bias_tok_ref, bias_null_ref, wout_ref, g_out_ref,
                  g_ff_ref, w1_ref, w2_ref, o_ref,
                  *, heads, dim_head, inner, add_residual):
    y = _attn_ff_body(
        x_ref[0], g_pre_ref[...], wq_ref[...], wkv_ref[...], nullkv_ref[...],
        cos_k_ref[...], sin_k_ref[...], cos_q_ref[...], sin_q_ref[...],
        bias_tok_ref[...], bias_null_ref[...], wout_ref[...], g_out_ref[...],
        g_ff_ref[...], w1_ref[...], w2_ref[...],
        heads=heads, dim_head=dim_head, inner=inner, add_residual=add_residual)
    o_ref[0] = y


def _layer_final_kernel(x_ref, g_pre_ref, wq_ref, wkv_ref, nullkv_ref, cos_k_ref, sin_k_ref,
                        cos_q_ref, sin_q_ref, bias_tok_ref, bias_null_ref, wout_ref, g_out_ref,
                        g_ff_ref, w1_ref, w2_ref, g_fin_ref, wproj_ref, o_ref,
                        *, heads, dim_head, inner, add_residual):
    y = _attn_ff_body(
        x_ref[0], g_pre_ref[...], wq_ref[...], wkv_ref[...], nullkv_ref[...],
        cos_k_ref[...], sin_k_ref[...], cos_q_ref[...], sin_q_ref[...],
        bias_tok_ref[...], bias_null_ref[...], wout_ref[...], g_out_ref[...],
        g_ff_ref[...], w1_ref[...], w2_ref[...],
        heads=heads, dim_head=dim_head, inner=inner, add_residual=add_residual)
    # stable LayerNorm (divide by per-row amax, as in the reference; note: ill-conditioned
    # if a row's max is ~0 or negative — matches the torch module's own behavior) + proj.
    amax = jnp.max(y, axis=-1, keepdims=True)
    ys = y * pl.reciprocal(amax, approx=True)
    normed = _layernorm(ys, g_fin_ref[...])
    o_ref[0] = jnp.dot(normed.astype(jnp.bfloat16), wproj_ref[...],
                       preferred_element_type=jnp.float32)


# ---------------------------------------------------------------------------
# pallas_call wrapper (grid over batch, "parallel" so v7x megacore shards it)
# ---------------------------------------------------------------------------
def _full_spec(a):
    nd = a.ndim
    return pl.BlockSpec(a.shape, lambda b, nd=nd: (0,) * nd)


def transformer_layer(x, ap, fp, tables, heads, dim_head, add_residual=True, final=None):
    b, n, d_in = x.shape
    d_out = fp["w2"].shape[1]
    inner = fp["w2"].shape[0]
    cos_k, sin_k, cos_q, sin_q, bias_tok, bias_null = tables

    args = [x, ap["g_pre"], ap["wq"], ap["wkv"], ap["null_kv"], cos_k, sin_k, cos_q, sin_q,
            bias_tok, bias_null, ap["wout"], ap["g_out"], fp["g"], fp["w1"], fp["w2"]]
    if final is not None:
        g_fin, wproj = final
        args += [g_fin, wproj]
        d_out = wproj.shape[1]
        kernel = functools.partial(_layer_final_kernel, heads=heads, dim_head=dim_head,
                                   inner=inner, add_residual=add_residual)
    else:
        kernel = functools.partial(_layer_kernel, heads=heads, dim_head=dim_head,
                                   inner=inner, add_residual=add_residual)

    in_specs = [pl.BlockSpec((1, n, d_in), lambda i: (i, 0, 0))] + \
               [_full_spec(a) for a in args[1:]]
    return pl.pallas_call(
        kernel,
        out_shape=jax.ShapeDtypeStruct((b, n, d_out), jnp.float32),
        grid=(b,),
        in_specs=in_specs,
        out_specs=pl.BlockSpec((1, n, d_out), lambda i: (i, 0, 0)),
        compiler_params=pltpu.CompilerParams(dimension_semantics=("parallel",)),
    )(*args)


# ---------------------------------------------------------------------------
# host-side glue: T5 relative position bias, rotary tables, parameter init
# ---------------------------------------------------------------------------
def rel_pos_bias(i, j, emb, num_buckets=32, max_distance=128):
    q_pos = jnp.arange(i)
    k_pos = jnp.arange(j)
    rel_pos = k_pos[None, :] - q_pos[:, None]             # (i, j)
    n = jnp.maximum(-rel_pos, 0)
    max_exact = num_buckets // 2
    is_small = n < max_exact
    n_f = jnp.maximum(n.astype(jnp.float32), 1.0)
    val_if_large = max_exact + (
        jnp.log(n_f / max_exact) / math.log(max_distance / max_exact)
        * (num_buckets - max_exact)
    ).astype(jnp.int32)
    val_if_large = jnp.minimum(val_if_large, num_buckets - 1)
    bucket = jnp.where(is_small, n, val_if_large)
    values = emb[bucket]                                   # (i, j, heads)
    return jnp.transpose(values, (2, 0, 1)).astype(jnp.float32)   # (heads, i, j)


def build_tables(rel_emb, n, heads, dim_head):
    # rotary tables; the concat-based rotate_half assumes rot_dim == dim_head (dim_head <= 32)
    rot_dim = min(32, dim_head)
    assert rot_dim == dim_head, "kernel assumes dim_head <= 32"  # TODO(synk): general rot_dim < dim_head
    half = rot_dim // 2
    inv_freq = 1.0 / (10000.0 ** (jnp.arange(0, rot_dim, 2, dtype=jnp.float32) / rot_dim))
    seq = jnp.arange(n, dtype=jnp.float32)
    freqs = seq[:, None] * inv_freq[None, :]               # (n, half)
    pos = jnp.concatenate([freqs, freqs], axis=-1)         # (n, dim_head)
    cos_k = jnp.cos(pos)
    sin_k = jnp.sin(pos)
    cos_q = jnp.tile(cos_k, (heads, 1))                    # (heads*n, dim_head): q is head-row-stacked
    sin_q = jnp.tile(sin_k, (heads, 1))

    # T5 relative position bias over (n, n+1); column 0 belongs to the learned null kv slot.
    bias = rel_pos_bias(n, n + 1, rel_emb)                 # (heads, n, n+1)
    bias_null = bias[:, :, :1].reshape(heads * n, 1)
    bias_tok = bias[:, :, 1:]                              # (heads, n, n)
    causal = jnp.arange(n)[None, :] > jnp.arange(n)[:, None]
    bias_tok = jnp.where(causal[None, :, :], MASK_VALUE, bias_tok)   # fold causal mask
    bias_tok = bias_tok.reshape(heads * n, n)              # head-row-stacked, matches q_st layout
    return (cos_k, sin_k, cos_q, sin_q,
            bias_tok.astype(jnp.bfloat16), bias_null.astype(jnp.bfloat16))


def init_params(key, dim, depth, heads, dim_head, ff_mult, dim_in_out=None):
    dim_in_out = dim if dim_in_out is None else dim_in_out
    inner_attn = heads * dim_head
    keys = iter(jax.random.split(key, 256))

    def lin(din, dout):
        w = jax.random.normal(next(keys), (din, dout), jnp.float32) / math.sqrt(din)
        return w.astype(jnp.bfloat16)            # bf16 MXU operands; matmuls accumulate in f32

    def attn_p(d_in, d_out):
        return dict(
            g_pre=jnp.ones((1, d_in), jnp.float32),
            wq=lin(d_in, inner_attn),
            wkv=lin(d_in, 2 * dim_head),
            null_kv=jax.random.normal(next(keys), (2, dim_head), jnp.float32),
            wout=lin(inner_attn, d_out),
            g_out=jnp.ones((1, d_out), jnp.float32),
        )

    def ff_p(d_in, d_out):
        inner = int(ff_mult * d_in)
        return dict(
            g=jnp.ones((1, d_in), jnp.float32),
            w1=lin(d_in, inner * 2),
            w2=lin(inner, d_out),
        )

    layers = [(attn_p(dim_in_out, dim), ff_p(dim, dim))]
    for _ in range(depth):
        layers.append((attn_p(dim, dim), ff_p(dim, dim)))
    layers.append((attn_p(dim, dim_in_out), ff_p(dim_in_out, dim_in_out)))

    return dict(
        layers=layers,
        rel_emb=0.02 * jax.random.normal(next(keys), (32, heads), jnp.float32),
        final_g=jnp.ones((1, dim_in_out), jnp.float32),
        wproj=lin(dim_in_out, dim_in_out),
    )


def causal_transformer_forward(x, params, heads, dim_head):
    b, n, _ = x.shape
    # init_norm is Identity (norm_in=False)
    tables = build_tables(params["rel_emb"], n, heads, dim_head)
    h = x
    n_layers = len(params["layers"])
    for idx, (ap, fp) in enumerate(params["layers"]):
        is_last = idx == n_layers - 1
        final = (params["final_g"], params["wproj"]) if is_last else None
        # use_same_dims=True (dim_in_out == dim) -> attention residual on every layer
        h = transformer_layer(h, ap, fp, tables, heads, dim_head,
                              add_residual=True, final=final)
    return h


# ---------------------------------------------------------------------------
if __name__ == "__main__":
    B, N = 2, 8
    DIM = 64
    DEPTH = 1          # -> depth + 2 = 3 transformer blocks
    HEADS = 4
    DIM_HEAD = 32
    FF_MULT = 4

    key = jax.random.PRNGKey(0)
    kx, kp = jax.random.split(key)
    x = jax.random.normal(kx, (B, N, DIM), dtype=jnp.float32)
    params = init_params(kp, dim=DIM, depth=DEPTH, heads=HEADS,
                         dim_head=DIM_HEAD, ff_mult=FF_MULT, dim_in_out=None)

    out = causal_transformer_forward(x, params, heads=HEADS, dim_head=DIM_HEAD)
    out = jax.block_until_ready(out)

    assert out.shape == (B, N, DIM), out.shape
    assert bool(jnp.all(jnp.isfinite(out)))
    print("KERNEL_OK")
</pallas_src>

<mosaic_0001>
module attributes {stable_mosaic.version = 11 : i64} {
  func.func @_layer_kernel(%arg0: i32, %arg1: memref<1x8x64xf32, #tpu.memory_space<vmem>>, %arg2: memref<1x64xf32, #tpu.memory_space<vmem>>, %arg3: memref<64x128xbf16, #tpu.memory_space<vmem>>, %arg4: memref<64x64xbf16, #tpu.memory_space<vmem>>, %arg5: memref<2x32xf32, #tpu.memory_space<vmem>>, %arg6: memref<8x32xf32, #tpu.memory_space<vmem>>, %arg7: memref<8x32xf32, #tpu.memory_space<vmem>>, %arg8: memref<32x32xf32, #tpu.memory_space<vmem>>, %arg9: memref<32x32xf32, #tpu.memory_space<vmem>>, %arg10: memref<32x8xbf16, #tpu.memory_space<vmem>>, %arg11: memref<32x1xbf16, #tpu.memory_space<vmem>>, %arg12: memref<128x64xbf16, #tpu.memory_space<vmem>>, %arg13: memref<1x64xf32, #tpu.memory_space<vmem>>, %arg14: memref<1x64xf32, #tpu.memory_space<vmem>>, %arg15: memref<64x512xbf16, #tpu.memory_space<vmem>>, %arg16: memref<256x64xbf16, #tpu.memory_space<vmem>>, %arg17: memref<1x8x64xf32, #tpu.memory_space<vmem>>) attributes {dimension_semantics = [#tpu.dimension_semantics<parallel>], iteration_bounds = array<i64: 2>, scalar_prefetch = 0 : i64, scratch_operands = 0 : i64, tpu.core_type = #tpu.core_type<tc>, window_params = [{transform_indices = @transform_0, window_bounds = array<i64: 1, 8, 64>}, {pipeline_mode = #tpu.pipeline_mode<synchronous>, transform_indices = @transform_1, window_bounds = array<i64: 1, 64>}, {pipeline_mode = #tpu.pipeline_mode<synchronous>, transform_indices = @transform_2, window_bounds = array<i64: 64, 128>}, {pipeline_mode = #tpu.pipeline_mode<synchronous>, transform_indices = @transform_3, window_bounds = array<i64: 64, 64>}, {pipeline_mode = #tpu.pipeline_mode<synchronous>, transform_indices = @transform_4, window_bounds = array<i64: 2, 32>}, {pipeline_mode = #tpu.pipeline_mode<synchronous>, transform_indices = @transform_5, window_bounds = array<i64: 8, 32>}, {pipeline_mode = #tpu.pipeline_mode<synchronous>, transform_indices = @transform_6, window_bounds = array<i64: 8, 32>}, {pipeline_mode = #tpu.pipeline_mode<synchronous>, transform_indices = @transform_7, window_bounds = array<i64: 32, 32>}, {pipeline_mode = #tpu.pipeline_mode<synchronous>, transform_indices = @transform_8, window_bounds = array<i64: 32, 32>}, {pipeline_mode = #tpu.pipeline_mode<synchronous>, transform_indices = @transform_9, window_bounds = array<i64: 32, 8>}, {pipeline_mode = #tpu.pipeline_mode<synchronous>, transform_indices = @transform_10, window_bounds = array<i64: 32, 1>}, {pipeline_mode = #tpu.pipeline_mode<synchronous>, transform_indices = @transform_11, window_bounds = array<i64: 128, 64>}, {pipeline_mode = #tpu.pipeline_mode<synchronous>, transform_indices = @transform_12, window_bounds = array<i64: 1, 64>}, {pipeline_mode = #tpu.pipeline_mode<synchronous>, transform_indices = @transform_13, window_bounds = array<i64: 1, 64>}, {pipeline_mode = #tpu.pipeline_mode<synchronous>, transform_indices = @transform_14, window_bounds = array<i64: 64, 512>}, {pipeline_mode = #tpu.pipeline_mode<synchronous>, transform_indices = @transform_15, window_bounds = array<i64: 256, 64>}, {transform_indices = @transform_16, window_bounds = array<i64: 1, 8, 64>}]} {
    %c0 = arith.constant 0 : index
    %c0_0 = arith.constant 0 : index
    %c0_1 = arith.constant 0 : index
    %0 = vector.load %arg1[%c0, %c0_0, %c0_1] : memref<1x8x64xf32, #tpu.memory_space<vmem>>, vector<1x8x64xf32>
    %1 = vector.shape_cast %0 : vector<1x8x64xf32> to vector<8x64xf32>
    %c0_2 = arith.constant 0 : index
    %c0_3 = arith.constant 0 : index
    %2 = vector.load %arg2[%c0_2, %c0_3] : memref<1x64xf32, #tpu.memory_space<vmem>>, vector<1x64xf32>
    %c0_4 = arith.constant 0 : index
    %c0_5 = arith.constant 0 : index
    %3 = vector.load %arg3[%c0_4, %c0_5] : memref<64x128xbf16, #tpu.memory_space<vmem>>, vector<64x128xbf16>
    %c0_6 = arith.constant 0 : index
    %c0_7 = arith.constant 0 : index
    %4 = vector.load %arg4[%c0_6, %c0_7] : memref<64x64xbf16, #tpu.memory_space<vmem>>, vector<64x64xbf16>
    %c0_8 = arith.constant 0 : index
    %c0_9 = arith.constant 0 : index
    %5 = vector.load %arg5[%c0_8, %c0_9] : memref<2x32xf32, #tpu.memory_space<vmem>>, vector<2x32xf32>
    %c0_10 = arith.constant 0 : index
    %c0_11 = arith.constant 0 : index
    %6 = vector.load %arg6[%c0_10, %c0_11] : memref<8x32xf32, #tpu.memory_space<vmem>>, vector<8x32xf32>
    %c0_12 = arith.constant 0 : index
    %c0_13 = arith.constant 0 : index
    %7 = vector.load %arg7[%c0_12, %c0_13] : memref<8x32xf32, #tpu.memory_space<vmem>>, vector<8x32xf32>
    %c0_14 = arith.constant 0 : index
    %c0_15 = arith.constant 0 : index
    %8 = vector.load %arg8[%c0_14, %c0_15] : memref<32x32xf32, #tpu.memory_space<vmem>>, vector<32x32xf32>
    %c0_16 = arith.constant 0 : index
    %c0_17 = arith.constant 0 : index
    %9 = vector.load %arg9[%c0_16, %c0_17] : memref<32x32xf32, #tpu.memory_space<vmem>>, vector<32x32xf32>
    %c0_18 = arith.constant 0 : index
    %c0_19 = arith.constant 0 : index
    %10 = vector.load %arg10[%c0_18, %c0_19] : memref<32x8xbf16, #tpu.memory_space<vmem>>, vector<32x8xbf16>
    %c0_20 = arith.constant 0 : index
    %c0_21 = arith.constant 0 : index
    %11 = vector.load %arg11[%c0_20, %c0_21] : memref<32x1xbf16, #tpu.memory_space<vmem>>, vector<32x1xbf16>
    %c0_22 = arith.constant 0 : index
    %c0_23 = arith.constant 0 : index
    %12 = vector.load %arg12[%c0_22, %c0_23] : memref<128x64xbf16, #tpu.memory_space<vmem>>, vector<128x64xbf16>
    %c0_24 = arith.constant 0 : index
    %c0_25 = arith.constant 0 : index
    %13 = vector.load %arg13[%c0_24, %c0_25] : memref<1x64xf32, #tpu.memory_space<vmem>>, vector<1x64xf32>
    %c0_26 = arith.constant 0 : index
    %c0_27 = arith.constant 0 : index
    %14 = vector.load %arg14[%c0_26, %c0_27] : memref<1x64xf32, #tpu.memory_space<vmem>>, vector<1x64xf32>
    %c0_28 = arith.constant 0 : index
    %c0_29 = arith.constant 0 : index
    %15 = vector.load %arg15[%c0_28, %c0_29] : memref<64x512xbf16, #tpu.memory_space<vmem>>, vector<64x512xbf16>
    %c0_30 = arith.constant 0 : index
    %c0_31 = arith.constant 0 : index
    %16 = vector.load %arg16[%c0_30, %c0_31] : memref<256x64xbf16, #tpu.memory_space<vmem>>, vector<256x64xbf16>
    %cst = arith.constant dense<0.000000e+00> : vector<8xf32>
    %17 = vector.multi_reduction <add>, %1, %cst [1] : vector<8x64xf32> to vector<8xf32>
    %18 = vector.shape_cast %17 : vector<8xf32> to vector<8x1xf32>
    %cst_32 = arith.constant 6.400000e+01 : f32
    %19 = vector.broadcast %cst_32 : f32 to vector<8x1xf32>
    %20 = arith.divf %18, %19 : vector<8x1xf32>
    %21 = vector.broadcast %20 : vector<8x1xf32> to vector<8x64xf32>
    %22 = arith.subf %1, %21 : vector<8x64xf32>
    %23 = arith.mulf %22, %22 : vector<8x64xf32>
    %cst_33 = arith.constant dense<0.000000e+00> : vector<8xf32>
    %24 = vector.multi_reduction <add>, %23, %cst_33 [1] : vector<8x64xf32> to vector<8xf32>
    %25 = vector.shape_cast %24 : vector<8xf32> to vector<8x1xf32>
    %cst_34 = arith.constant 6.400000e+01 : f32
    %26 = vector.broadcast %cst_34 : f32 to vector<8x1xf32>
    %27 = arith.divf %25, %26 : vector<8x1xf32>
    %28 = vector.broadcast %20 : vector<8x1xf32> to vector<8x64xf32>
    %29 = arith.subf %1, %28 : vector<8x64xf32>
    %cst_35 = arith.constant 9.99999974E-6 : f32
    %30 = vector.broadcast %cst_35 : f32 to vector<8x1xf32>
    %31 = arith.addf %27, %30 : vector<8x1xf32>
    %32 = math.rsqrt %31 : vector<8x1xf32>
    %33 = vector.broadcast %32 : vector<8x1xf32> to vector<8x64xf32>
    %34 = arith.mulf %29, %33 : vector<8x64xf32>
    %35 = vector.broadcast %2 : vector<1x64xf32> to vector<8x64xf32>
    %36 = arith.mulf %34, %35 : vector<8x64xf32>
    %37 = arith.truncf %36 : vector<8x64xf32> to vector<8x64xbf16>
    %cst_36 = arith.constant dense<0.000000e+00> : vector<8x128xf32>
    %38 = tpu.matmul %37, %3, %cst_36 {dimension_numbers = #tpu.dot_dimension_numbers<[1], [0], [0], [1], [0, 0, 1, 1], [], []>} : vector<8x64xbf16>, vector<64x128xbf16>, vector<8x128xf32> -> vector<8x128xf32>
    %cst_37 = arith.constant dense<0.000000e+00> : vector<8x64xf32>
    %39 = tpu.matmul %37, %4, %cst_37 {dimension_numbers = #tpu.dot_dimension_numbers<[1], [0], [0], [1], [0, 0, 1, 1], [], []>} : vector<8x64xbf16>, vector<64x64xbf16>, vector<8x64xf32> -> vector<8x64xf32>
    %40 = vector.extract_strided_slice %39 {offsets = [0, 0], sizes = [8, 32], strides = [1, 1]} : vector<8x64xf32> to vector<8x32xf32>
    %41 = vector.extract_strided_slice %39 {offsets = [0, 32], sizes = [8, 32], strides = [1, 1]} : vector<8x64xf32> to vector<8x32xf32>
    %42 = arith.mulf %40, %6 : vector<8x32xf32>
    %43 = vector.extract_strided_slice %40 {offsets = [0, 16], sizes = [8, 16], strides = [1, 1]} : vector<8x32xf32> to vector<8x16xf32>
    %cst_38 = arith.constant 0.000000e+00 : f32
    %44 = vector.broadcast %cst_38 : f32 to vector<8x16xf32>
    %45 = arith.subf %44, %43 : vector<8x16xf32>
    %46 = vector.extract_strided_slice %40 {offsets = [0, 0], sizes = [8, 16], strides = [1, 1]} : vector<8x32xf32> to vector<8x16xf32>
    %47 = tpu.concatenate %45, %46 in 1 : vector<8x16xf32>, vector<8x16xf32> -> vector<8x32xf32>
    %48 = arith.mulf %47, %7 : vector<8x32xf32>
    %49 = arith.addf %42, %48 : vector<8x32xf32>
    %50 = arith.mulf %49, %49 : vector<8x32xf32>
    %cst_39 = arith.constant dense<0.000000e+00> : vector<8xf32>
    %51 = vector.multi_reduction <add>, %50, %cst_39 [1] : vector<8x32xf32> to vector<8xf32>
    %52 = vector.shape_cast %51 : vector<8xf32> to vector<8x1xf32>
    %cst_40 = arith.constant 1.000000e-24 : f32
    %53 = vector.broadcast %cst_40 : f32 to vector<8x1xf32>
    %54 = arith.maximumf %52, %53 : vector<8x1xf32>
    %55 = math.rsqrt %54 : vector<8x1xf32>
    %56 = vector.broadcast %55 : vector<8x1xf32> to vector<8x32xf32>
    %57 = arith.mulf %49, %56 : vector<8x32xf32>
    %cst_41 = arith.constant 4.000000e+00 : f32
    %58 = vector.broadcast %cst_41 : f32 to vector<8x32xf32>
    %59 = arith.mulf %57, %58 : vector<8x32xf32>
    %60 = arith.truncf %59 : vector<8x32xf32> to vector<8x32xbf16>
    %61 = vector.extract_strided_slice %5 {offsets = [0, 0], sizes = [1, 32], strides = [1, 1]} : vector<2x32xf32> to vector<1x32xf32>
    %62 = vector.extract_strided_slice %5 {offsets = [1, 0], sizes = [1, 32], strides = [1, 1]} : vector<2x32xf32> to vector<1x32xf32>
    %63 = arith.mulf %61, %61 : vector<1x32xf32>
    %cst_42 = arith.constant dense<0.000000e+00> : vector<1xf32>
    %64 = vector.multi_reduction <add>, %63, %cst_42 [1] : vector<1x32xf32> to vector<1xf32>
    %65 = vector.shape_cast %64 : vector<1xf32> to vector<1x1xf32>
    %cst_43 = arith.constant 1.000000e-24 : f32
    %66 = vector.broadcast %cst_43 : f32 to vector<1x1xf32>
    %67 = arith.maximumf %65, %66 : vector<1x1xf32>
    %68 = math.rsqrt %67 : vector<1x1xf32>
    %69 = vector.broadcast %68 : vector<1x1xf32> to vector<1x32xf32>
    %70 = arith.mulf %61, %69 : vector<1x32xf32>
    %cst_44 = arith.constant 4.000000e+00 : f32
    %71 = vector.broadcast %cst_44 : f32 to vector<1x32xf32>
    %72 = arith.mulf %70, %71 : vector<1x32xf32>
    %73 = vector.extract_strided_slice %38 {offsets = [0, 0], sizes = [8, 32], strides = [1, 1]} : vector<8x128xf32> to vector<8x32xf32>
    %74 = vector.extract_strided_slice %38 {offsets = [0, 32], sizes = [8, 32], strides = [1, 1]} : vector<8x128xf32> to vector<8x32xf32>
    %75 = vector.extract_strided_slice %38 {offsets = [0, 64], sizes = [8, 32], strides = [1, 1]} : vector<8x128xf32> to vector<8x32xf32>
    %76 = vector.extract_strided_slice %38 {offsets = [0, 96], sizes = [8, 32], strides = [1, 1]} : vector<8x128xf32> to vector<8x32xf32>
    %77 = tpu.concatenate %73, %74, %75, %76 in 0 : vector<8x32xf32>, vector<8x32xf32>, vector<8x32xf32>, vector<8x32xf32> -> vector<32x32xf32>
    %78 = arith.mulf %77, %8 : vector<32x32xf32>
    %79 = vector.extract_strided_slice %77 {offsets = [0, 16], sizes = [32, 16], strides = [1, 1]} : vector<32x32xf32> to vector<32x16xf32>
    %cst_45 = arith.constant 0.000000e+00 : f32
    %80 = vector.broadcast %cst_45 : f32 to vector<32x16xf32>
    %81 = arith.subf %80, %79 : vector<32x16xf32>
    %82 = vector.extract_strided_slice %77 {offsets = [0, 0], sizes = [32, 16], strides = [1, 1]} : vector<32x32xf32> to vector<32x16xf32>
    %83 = tpu.concatenate %81, %82 in 1 : vector<32x16xf32>, vector<32x16xf32> -> vector<32x32xf32>
    %84 = arith.mulf %83, %9 : vector<32x32xf32>
    %85 = arith.addf %78, %84 : vector<32x32xf32>
    %86 = arith.mulf %85, %85 : vector<32x32xf32>
    %cst_46 = arith.constant dense<0.000000e+00> : vector<32xf32>
    %87 = vector.multi_reduction <add>, %86, %cst_46 [1] : vector<32x32xf32> to vector<32xf32>
    %88 = vector.shape_cast %87 : vector<32xf32> to vector<32x1xf32>
    %cst_47 = arith.constant 1.000000e-24 : f32
    %89 = vector.broadcast %cst_47 : f32 to vector<32x1xf32>
    %90 = arith.maximumf %88, %89 : vector<32x1xf32>
    %91 = math.rsqrt %90 : vector<32x1xf32>
    %92 = vector.broadcast %91 : vector<32x1xf32> to vector<32x32xf32>
    %93 = arith.mulf %85, %92 : vector<32x32xf32>
    %cst_48 = arith.constant 4.000000e+00 : f32
    %94 = vector.broadcast %cst_48 : f32 to vector<32x32xf32>
    %95 = arith.mulf %93, %94 : vector<32x32xf32>
    %96 = arith.truncf %95 : vector<32x32xf32> to vector<32x32xbf16>
    %cst_49 = arith.constant dense<0.000000e+00> : vector<32x8xf32>
    %97 = tpu.matmul %96, %60, %cst_49 {dimension_numbers = #tpu.dot_dimension_numbers<[1], [1], [0], [0], [0, 0, 1, 0], [], []>} : vector<32x32xbf16>, vector<8x32xbf16>, vector<32x8xf32> -> vector<32x8xf32>
    %98 = arith.extf %10 : vector<32x8xbf16> to vector<32x8xf32>
    %99 = arith.addf %97, %98 : vector<32x8xf32>
    %100 = vector.broadcast %72 : vector<1x32xf32> to vector<32x32xf32>
    %101 = arith.mulf %95, %100 : vector<32x32xf32>
    %cst_50 = arith.constant dense<0.000000e+00> : vector<32xf32>
    %102 = vector.multi_reduction <add>, %101, %cst_50 [1] : vector<32x32xf32> to vector<32xf32>
    %103 = vector.shape_cast %102 : vector<32xf32> to vector<32x1xf32>
    %104 = arith.extf %11 : vector<32x1xbf16> to vector<32x1xf32>
    %105 = arith.addf %103, %104 : vector<32x1xf32>
    %cst_51 = arith.constant dense<0xFF800000> : vector<32xf32>
    %106 = vector.multi_reduction <maximumf>, %99, %cst_51 [1] : vector<32x8xf32> to vector<32xf32>
    %107 = vector.shape_cast %106 : vector<32xf32> to vector<32x1xf32>
    %108 = arith.maximumf %107, %105 : vector<32x1xf32>
    %109 = vector.broadcast %108 : vector<32x1xf32> to vector<32x8xf32>
    %110 = arith.subf %99, %109 : vector<32x8xf32>
    %111 = math.exp %110 : vector<32x8xf32>
    %112 = arith.subf %105, %108 : vector<32x1xf32>
    %113 = math.exp %112 : vector<32x1xf32>
    %cst_52 = arith.constant dense<0.000000e+00> : vector<32xf32>
    %114 = vector.multi_reduction <add>, %111, %cst_52 [1] : vector<32x8xf32> to vector<32xf32>
    %115 = vector.shape_cast %114 : vector<32xf32> to vector<32x1xf32>
    %116 = arith.addf %115, %113 : vector<32x1xf32>
    %117 = arith.truncf %111 : vector<32x8xf32> to vector<32x8xbf16>
    %118 = arith.truncf %41 : vector<8x32xf32> to vector<8x32xbf16>
    %cst_53 = arith.constant dense<0.000000e+00> : vector<32x32xf32>
    %119 = tpu.matmul %117, %118, %cst_53 {dimension_numbers = #tpu.dot_dimension_numbers<[1], [0], [0], [1], [0, 0, 1, 1], [], []>} : vector<32x8xbf16>, vector<8x32xbf16>, vector<32x32xf32> -> vector<32x32xf32>
    %120 = vector.broadcast %113 : vector<32x1xf32> to vector<32x32xf32>
    %121 = vector.broadcast %62 : vector<1x32xf32> to vector<32x32xf32>
    %122 = arith.mulf %120, %121 : vector<32x32xf32>
    %123 = arith.addf %119, %122 : vector<32x32xf32>
    %124 = tpu.reciprocal %116 {approx = true} : vector<32x1xf32> -> vector<32x1xf32>
    %125 = vector.broadcast %124 : vector<32x1xf32> to vector<32x32xf32>
    %126 = arith.mulf %123, %125 : vector<32x32xf32>
    %127 = vector.extract_strided_slice %126 {offsets = [0, 0], sizes = [8, 32], strides = [1, 1]} : vector<32x32xf32> to vector<8x32xf32>
    %128 = vector.extract_strided_slice %126 {offsets = [8, 0], sizes = [8, 32], strides = [1, 1]} : vector<32x32xf32> to vector<8x32xf32>
    %129 = vector.extract_strided_slice %126 {offsets = [16, 0], sizes = [8, 32], strides = [1, 1]} : vector<32x32xf32> to vector<8x32xf32>
    %130 = vector.extract_strided_slice %126 {offsets = [24, 0], sizes = [8, 32], strides = [1, 1]} : vector<32x32xf32> to vector<8x32xf32>
    %131 = tpu.concatenate %127, %128, %129, %130 in 1 : vector<8x32xf32>, vector<8x32xf32>, vector<8x32xf32>, vector<8x32xf32> -> vector<8x128xf32>
    %132 = arith.truncf %131 : vector<8x128xf32> to vector<8x128xbf16>
    %cst_54 = arith.constant dense<0.000000e+00> : vector<8x64xf32>
    %133 = tpu.matmul %132, %12, %cst_54 {dimension_numbers = #tpu.dot_dimension_numbers<[1], [0], [0], [1], [0, 0, 1, 1], [], []>} : vector<8x128xbf16>, vector<128x64xbf16>, vector<8x64xf32> -> vector<8x64xf32>
    %cst_55 = arith.constant dense<0.000000e+00> : vector<8xf32>
    %134 = vector.multi_reduction <add>, %133, %cst_55 [1] : vector<8x64xf32> to vector<8xf32>
    %135 = vector.shape_cast %134 : vector<8xf32> to vector<8x1xf32>
    %cst_56 = arith.constant 6.400000e+01 : f32
    %136 = vector.broadcast %cst_56 : f32 to vector<8x1xf32>
    %137 = arith.divf %135, %136 : vector<8x1xf32>
    %138 = vector.broadcast %137 : vector<8x1xf32> to vector<8x64xf32>
    %139 = arith.subf %133, %138 : vector<8x64xf32>
    %140 = arith.mulf %139, %139 : vector<8x64xf32>
    %cst_57 = arith.constant dense<0.000000e+00> : vector<8xf32>
    %141 = vector.multi_reduction <add>, %140, %cst_57 [1] : vector<8x64xf32> to vector<8xf32>
    %142 = vector.shape_cast %141 : vector<8xf32> to vector<8x1xf32>
    %cst_58 = arith.constant 6.400000e+01 : f32
    %143 = vector.broadcast %cst_58 : f32 to vector<8x1xf32>
    %144 = arith.divf %142, %143 : vector<8x1xf32>
    %145 = vector.broadcast %137 : vector<8x1xf32> to vector<8x64xf32>
    %146 = arith.subf %133, %145 : vector<8x64xf32>
    %cst_59 = arith.constant 9.99999974E-6 : f32
    %147 = vector.broadcast %cst_59 : f32 to vector<8x1xf32>
    %148 = arith.addf %144, %147 : vector<8x1xf32>
    %149 = math.rsqrt %148 : vector<8x1xf32>
    %150 = vector.broadcast %149 : vector<8x1xf32> to vector<8x64xf32>
    %151 = arith.mulf %146, %150 : vector<8x64xf32>
    %152 = vector.broadcast %13 : vector<1x64xf32> to vector<8x64xf32>
    %153 = arith.mulf %151, %152 : vector<8x64xf32>
    %154 = arith.addf %153, %1 : vector<8x64xf32>
    %cst_60 = arith.constant dense<0.000000e+00> : vector<8xf32>
    %155 = vector.multi_reduction <add>, %154, %cst_60 [1] : vector<8x64xf32> to vector<8xf32>
    %156 = vector.shape_cast %155 : vector<8xf32> to vector<8x1xf32>
    %cst_61 = arith.constant 6.400000e+01 : f32
    %157 = vector.broadcast %cst_61 : f32 to vector<8x1xf32>
    %158 = arith.divf %156, %157 : vector<8x1xf32>
    %159 = vector.broadcast %158 : vector<8x1xf32> to vector<8x64xf32>
    %160 = arith.subf %154, %159 : vector<8x64xf32>
    %161 = arith.mulf %160, %160 : vector<8x64xf32>
    %cst_62 = arith.constant dense<0.000000e+00> : vector<8xf32>
    %162 = vector.multi_reduction <add>, %161, %cst_62 [1] : vector<8x64xf32> to vector<8xf32>
    %163 = vector.shape_cast %162 : vector<8xf32> to vector<8x1xf32>
    %cst_63 = arith.constant 6.400000e+01 : f32
    %164 = vector.broadcast %cst_63 : f32 to vector<8x1xf32>
    %165 = arith.divf %163, %164 : vector<8x1xf32>
    %166 = vector.broadcast %158 : vector<8x1xf32> to vector<8x64xf32>
    %167 = arith.subf %154, %166 : vector<8x64xf32>
    %cst_64 = arith.constant 9.99999974E-6 : f32
    %168 = vector.broadcast %cst_64 : f32 to vector<8x1xf32>
    %169 = arith.addf %165, %168 : vector<8x1xf32>
    %170 = math.rsqrt %169 : vector<8x1xf32>
    %171 = vector.broadcast %170 : vector<8x1xf32> to vector<8x64xf32>
    %172 = arith.mulf %167, %171 : vector<8x64xf32>
    %173 = vector.broadcast %14 : vector<1x64xf32> to vector<8x64xf32>
    %174 = arith.mulf %172, %173 : vector<8x64xf32>
    %175 = arith.truncf %174 : vector<8x64xf32> to vector<8x64xbf16>
    %cst_65 = arith.constant dense<0.000000e+00> : vector<8x512xf32>
    %176 = tpu.matmul %175, %15, %cst_65 {dimension_numbers = #tpu.dot_dimension_numbers<[1], [0], [0], [1], [0, 0, 1, 1], [], []>} : vector<8x64xbf16>, vector<64x512xbf16>, vector<8x512xf32> -> vector<8x512xf32>
    %177 = vector.extract_strided_slice %176 {offsets = [0, 0], sizes = [8, 256], strides = [1, 1]} : vector<8x512xf32> to vector<8x256xf32>
    %178 = vector.extract_strided_slice %176 {offsets = [0, 256], sizes = [8, 256], strides = [1, 1]} : vector<8x512xf32> to vector<8x256xf32>
    %179 = arith.negf %178 : vector<8x256xf32>
    %180 = math.exp %179 : vector<8x256xf32>
    %cst_66 = arith.constant 1.000000e+00 : f32
    %181 = vector.broadcast %cst_66 : f32 to vector<8x256xf32>
    %182 = arith.addf %181, %180 : vector<8x256xf32>
    %183 = arith.divf %181, %182 : vector<8x256xf32>
    %184 = arith.mulf %178, %183 : vector<8x256xf32>
    %185 = arith.mulf %177, %184 : vector<8x256xf32>
    %186 = arith.truncf %185 : vector<8x256xf32> to vector<8x256xbf16>
    %cst_67 = arith.constant dense<0.000000e+00> : vector<8x64xf32>
    %187 = tpu.matmul %186, %16, %cst_67 {dimension_numbers = #tpu.dot_dimension_numbers<[1], [0], [0], [1], [0, 0, 1, 1], [], []>} : vector<8x256xbf16>, vector<256x64xbf16>, vector<8x64xf32> -> vector<8x64xf32>
    %188 = arith.addf %187, %154 : vector<8x64xf32>
    %c0_68 = arith.constant 0 : index
    %c0_69 = arith.constant 0 : index
    %c0_70 = arith.constant 0 : index
    %189 = vector.load %arg17[%c0_68, %c0_69, %c0_70] : memref<1x8x64xf32, #tpu.memory_space<vmem>>, vector<1x8x64xf32>
    %190 = vector.shape_cast %189 : vector<1x8x64xf32> to vector<8x64xf32>
    %191 = vector.shape_cast %188 : vector<8x64xf32> to vector<1x8x64xf32>
    tpu.vector_store %arg17[%c0_68, %c0_69, %c0_70], %191 {strides = array<i32>} : memref<1x8x64xf32, #tpu.memory_space<vmem>>, vector<1x8x64xf32>,
    return
  }
  func.func @transform_0(%arg0: i32) -> (i32, i32, i32) {
    %c0_i32 = arith.constant 0 : i32
    %c0_i32_0 = arith.constant 0 : i32
    %c0_i32_1 = arith.constant 0 : i32
    return %arg0, %c0_i32, %c0_i32_0 : i32, i32, i32
  }
  func.func @transform_1(%arg0: i32) -> (i32, i32) {
    %c0_i32 = arith.constant 0 : i32
    %c0_i32_0 = arith.constant 0 : i32
    %c0_i32_1 = arith.constant 0 : i32
    return %c0_i32, %c0_i32_0 : i32, i32
  }
  func.func @transform_2(%arg0: i32) -> (i32, i32) {
    %c0_i32 = arith.constant 0 : i32
    %c0_i32_0 = arith.constant 0 : i32
    %c0_i32_1 = arith.constant 0 : i32
    return %c0_i32, %c0_i32_0 : i32, i32
  }
  func.func @transform_3(%arg0: i32) -> (i32, i32) {
    %c0_i32 = arith.constant 0 : i32
    %c0_i32_0 = arith.constant 0 : i32
    %c0_i32_1 = arith.constant 0 : i32
    return %c0_i32, %c0_i32_0 : i32, i32
  }
  func.func @transform_4(%arg0: i32) -> (i32, i32) {
    %c0_i32 = arith.constant 0 : i32
    %c0_i32_0 = arith.constant 0 : i32
    %c0_i32_1 = arith.constant 0 : i32
    return %c0_i32, %c0_i32_0 : i32, i32
  }
  func.func @transform_5(%arg0: i32) -> (i32, i32) {
    %c0_i32 = arith.constant 0 : i32
    %c0_i32_0 = arith.constant 0 : i32
    %c0_i32_1 = arith.constant 0 : i32
    return %c0_i32, %c0_i32_0 : i32, i32
  }
  func.func @transform_6(%arg0: i32) -> (i32, i32) {
    %c0_i32 = arith.constant 0 : i32
    %c0_i32_0 = arith.constant 0 : i32
    %c0_i32_1 = arith.constant 0 : i32
    return %c0_i32, %c0_i32_0 : i32, i32
  }
  func.func @transform_7(%arg0: i32) -> (i32, i32) {
    %c0_i32 = arith.constant 0 : i32
    %c0_i32_0 = arith.constant 0 : i32
    %c0_i32_1 = arith.constant 0 : i32
    return %c0_i32, %c0_i32_0 : i32, i32
  }
  func.func @transform_8(%arg0: i32) -> (i32, i32) {
    %c0_i32 = arith.constant 0 : i32
    %c0_i32_0 = arith.constant 0 : i32
    %c0_i32_1 = arith.constant 0 : i32
    return %c0_i32, %c0_i32_0 : i32, i32
  }
  func.func @transform_9(%arg0: i32) -> (i32, i32) {
    %c0_i32 = arith.constant 0 : i32
    %c0_i32_0 = arith.constant 0 : i32
    %c0_i32_1 = arith.constant 0 : i32
    return %c0_i32, %c0_i32_0 : i32, i32
  }
  func.func @transform_10(%arg0: i32) -> (i32, i32) {
    %c0_i32 = arith.constant 0 : i32
    %c0_i32_0 = arith.constant 0 : i32
    %c0_i32_1 = arith.constant 0 : i32
    return %c0_i32, %c0_i32_0 : i32, i32
  }
  func.func @transform_11(%arg0: i32) -> (i32, i32) {
    %c0_i32 = arith.constant 0 : i32
    %c0_i32_0 = arith.constant 0 : i32
    %c0_i32_1 = arith.constant 0 : i32
    return %c0_i32, %c0_i32_0 : i32, i32
  }
  func.func @transform_12(%arg0: i32) -> (i32, i32) {
    %c0_i32 = arith.constant 0 : i32
    %c0_i32_0 = arith.constant 0 : i32
    %c0_i32_1 = arith.constant 0 : i32
    return %c0_i32, %c0_i32_0 : i32, i32
  }
  func.func @transform_13(%arg0: i32) -> (i32, i32) {
    %c0_i32 = arith.constant 0 : i32
    %c0_i32_0 = arith.constant 0 : i32
    %c0_i32_1 = arith.constant 0 : i32
    return %c0_i32, %c0_i32_0 : i32, i32
  }
  func.func @transform_14(%arg0: i32) -> (i32, i32) {
    %c0_i32 = arith.constant 0 : i32
    %c0_i32_0 = arith.constant 0 : i32
    %c0_i32_1 = arith.constant 0 : i32
    return %c0_i32, %c0_i32_0 : i32, i32
  }
  func.func @transform_15(%arg0: i32) -> (i32, i32) {
    %c0_i32 = arith.constant 0 : i32
    %c0_i32_0 = arith.constant 0 : i32
    %c0_i32_1 = arith.constant 0 : i32
    return %c0_i32, %c0_i32_0 : i32, i32
  }
  func.func @transform_16(%arg0: i32) -> (i32, i32, i32) {
    %c0_i32 = arith.constant 0 : i32
    %c0_i32_0 = arith.constant 0 : i32
    %c0_i32_1 = arith.constant 0 : i32
    return %arg0, %c0_i32, %c0_i32_0 : i32, i32, i32
  }
}

</mosaic_0001>

<bundles_post_ra>
// kernel: tpu_custom_call.1
= control target key start
LH: loop header
LB: loop body
LE: loop exit
PB: predicated region body
PF: predicated region fallthrough
CT: control target
= control target key end

     0   :  { %s3012_s0 = inlined_call_operand.vmem [shape: f32[2,8,64], index: 0, kind: input, shape index: {}]   ;;  %s3013_s1 = inlined_call_operand.hbm [shape: f32[1,64], index: 1, kind: input, shape index: {}]   ;;  %s3014_s2 = inlined_call_operand.vmem [shape: bf16[64,128], index: 2, kind: input, shape index: {}]   ;;  %s3015_s3 = inlined_call_operand.vmem [shape: bf16[64,64], index: 3, kind: input, shape index: {}]   ;;  %s3016_s4 = inlined_call_operand.hbm [shape: f32[2,32], index: 4, kind: input, shape index: {}]   ;;  %s3017_s5 = inlined_call_operand.vmem [shape: f32[8,32], index: 5, kind: input, shape index: {}]   ;;  %s3018_s6 = inlined_call_operand.hbm [shape: f32[8,32], index: 6, kind: input, shape index: {}]   ;;  %s3019_s7 = inlined_call_operand.vmem [shape: f32[32,32], index: 7, kind: input, shape index: {}]   ;;  %s3020_s8 = inlined_call_operand.hbm [shape: f32[32,32], index: 8, kind: input, shape index: {}]   ;;  %s3021_s9 = inlined_call_operand.vmem [shape: bf16[32,8], index: 9, kind: input, shape index: {}]   ;;  %s3022_s10 = inlined_call_operand.vmem [shape: bf16[32,1], index: 10, kind: input, shape index: {}]   ;;  %s3023_s11 = inlined_call_operand.vmem [shape: bf16[128,64], index: 11, kind: input, shape index: {}]   ;;  %s3024_s12 = inlined_call_operand.vmem [shape: f32[1,64], index: 12, kind: input, shape index: {}]   ;;  %s3025_s13 = inlined_call_operand.hbm [shape: f32[1,64], index: 13, kind: input, shape index: {}]   ;;  %s3026_s14 = inlined_call_operand.vmem [shape: bf16[64,512], index: 14, kind: input, shape index: {}]   ;;  %s3027_s15 = inlined_call_operand.vmem [shape: bf16[256,64], index: 15, kind: input, shape index: {}]   ;;  %s3028_s16 = inlined_call_operand.hbm [shape: f32[2,8,64], index: 16, kind: output, shape index: {}]  }
   0x1   :  { %3039 = sst [smem:[#allocation22_spill]] %s3012_s0 }
   0x2   :  { %3040 = sst [smem:[#allocation23_spill]] %s3028_s16 }
   0x3   :  { %21 = vsyncpa [#allocation3], 0 }
   0x4   :  { %22 = vsyncpa [#allocation6], 0 }
   0x5   :  { %23 = vsyncpa [#allocation9], 0 }
   0x6   :  { %24 = vsyncpa [#allocation4], 0 }
   0x7   :  { %26 = vsyncpa [#allocation4 + $0x1], 0  ;;  %s2560_s21 = smov 0   ;;  %s2562_s22 = smov 0  }
   0x8   :  { %s2564_s23 = smov 0   ;;  %s2566_s24 = smov 0  }
   0x9 LB: > { %3041 = sst [smem:[#allocation16_spill]] %s2445_s21  ;;  %s2581_s25 = sadd.s32 4294967295, %s2457_s24   ;;  %s2457_s24 = sphi %s2566_s24, %s3066_s24   ;;  %s2453_s23 = sphi %s2564_s23, %s3068_s23   ;;  %s2449_s22 = sphi %s2562_s22, %s3070_s22   ;;  %s2445_s21 = sphi %s2560_s21, %s3069_s21  }
   0xa   : > { %3042 = sst [smem:[#allocation17_spill]] %s2453_s23  ;;  %s1843_s26 = sadd.s32 4294967294, %s2457_s24  }
   0xb   : > { %3043 = sst [smem:[#allocation18_spill]] %s2457_s24  ;;  %s2585_s27 = sadd.s32 1, %s2457_s24  }
   0xc   : > { %3044 = sst [smem:[#allocation19_spill]] %s2585_s27  ;;  %s380_s28 = sadd.s32 1, %s2453_s23 }
   0xd   : > { %s377_s29 = ssub.s32 %s2457_s24, %s2585_s27  ;;  %p390_p0 = scmp.ne.s32.totalorder %s2453_s23, %s2449_s22 }
   0xe   : > { %p378_p1 = scmp.eq.s32.totalorder %s377_s29, 0  ;;  %p391_p2 = scmp.eq.s32.totalorder %s2581_s25, 1 }
   0xf   : > { %p396_p3 = scmp.ne.s32.totalorder %s2449_s22, %s2445_s21  ;;  %p397_p4 = scmp.eq.s32.totalorder %s1843_s26, 1 }
  0x10   : > { %s2596_s30 = scalar_select %p378_p1, %s2453_s23, %s380_s28  }
  0x11   : > { %p2598_p5 = por %p391_p2, %p390_p0  ;;  %p2602_p6 = por %p397_p4, %p396_p3 }
  0x12   : > { %3045 = sst [smem:[#allocation20_spill]] %s2596_s30  ;;  %p1844_p7 = scmp.ge.s32.totalorder %s2457_s24, 1 }
  0x13   : > { %s3046_s0 = scalar_select %p2598_p5, 1, 0 }
  0x14   : > { %s3047_s17 = scalar_select %p2602_p6, 1, 0 }
  0x15   : > { %p404_p8 = scmp.lt.s32.totalorder %s2457_s24, 3  ;;  %p3033_p9 = scmp.eq.s32.totalorder %s2581_s25, 0 }
  0x16   : > { %3048 = sst [smem:[#allocation21_spill]] %s3047_s17  ;;  %s2459_s19 = smov [#allocation5]  }
  0x17   : > { %p2609_p10 = pnand %p1844_p7, %p404_p8  ;;  %s434_s20 = sshll.u32 %s2459_s19, 4  ;;  %s435_s20 = int_to_ptr.vmem [resolvable:$true] %s434_s20 }
  0x18   : > { %s2460_s26 = smov [#allocation8]   ;;  %s2461_s30 = smov [#allocation2]  }
  0x19   : > { %s3049_s18 = scalar_select %p2609_p10, 1, 0 }
  0x1a   : > { %p2069_p11 = pneg %p2609_p10  ;;  %s461_s28 = sshll.u32 %s2460_s26, 4  ;;  %s462_s28 = int_to_ptr.vmem [resolvable:$true] %s461_s28 }
  0x1b   : > { %s417_s23 = sshll.u32 %s2461_s30, 4  ;;  %s2266_s19 = scalar_lea.vmem %s435_s20, 32  ;;  %s418_s23 = int_to_ptr.vmem [resolvable:$true] %s417_s23 }
  0x1c   : > { %p2617_p12 = pnand %p3033_p9, %p2069_p11  ;;  %p2267_p0 = scmp.ne.s32.totalorder %s435_s20, %s2266_s19 }
  0x1d   : > { %p2274_p3 = scmp.lt.s32.totalorder %s435_s20, %s435_s20  ;;  %p2275_p4 = scmp.lt.s32.totalorder %s2266_s19, %s2266_s19 }
  0x1e   : > { %p2623_p13 = pneg %p2617_p12 }
  0x1f   : > { %p2276_p7 = por %p2275_p4, %p2274_p3 }
  0x20   : > { %p2269_p1 = pnand %p2267_p0, %p2623_p13 }
  0x22   : > { %p2270_p2 = pneg %p2269_p1 }
  0x24   : > { %p2277_p8 = pnand %p2276_p7, %p2270_p2 }
  0x26   : > { %2280 = shalt.err (!%p2277_p8)
}
  0x27   : > { %2075 = dma.hbm_to_vmem [thread:$0]  (!%p2617_p12), %s3016_s4, 32, %s435_s20, [#allocation6]  }
  0x28   : > { %s2292_s17 = scalar_lea.vmem %s462_s28, 512  ;;  %p2300_p5 = scmp.lt.s32.totalorder %s462_s28, %s462_s28 }
  0x29   : > { %p2293_p11 = scmp.ne.s32.totalorder %s462_s28, %s2292_s17  ;;  %p2301_p0 = scmp.lt.s32.totalorder %s2292_s17, %s2292_s17 }
  0x2b   : > { %p2295_p9 = pnand %p2293_p11, %p2623_p13  ;;  %p2302_p1 = por %p2301_p0, %p2300_p5 }
  0x2d   : > { %p2296_p6 = pneg %p2295_p9 }
  0x2f   : > { %p2303_p10 = pnand %p2302_p1, %p2296_p6 }
  0x31   : > { %2306 = shalt.err (!%p2303_p10)
}
  0x32   : > { %s2462_s19 = smov 128   ;;  %s2463_s21 = smov 8  }
  0x33   : > { %2081 = dma.hbm_to_vmem [thread:$0]  (!%p2617_p12), %s3020_s8, 512, %s462_s28, [#allocation9], %s2462_s19, %s2462_s19, %s2463_s21  }
  0x34   : > { %s2318_s20 = scalar_lea.vmem %s418_s23, 16  ;;  %s2325_s26 = scalar_lea.vmem %s418_s23, 32 }
  0x35   : > { %p2319_p2 = scmp.ne.s32.totalorder %s418_s23, %s2318_s20  ;;  %p2326_p4 = scmp.lt.s32.totalorder %s418_s23, %s418_s23 }
  0x36   : > { %p2327_p5 = scmp.lt.s32.totalorder %s2325_s26, %s2318_s20 }
  0x37   : > { %p2321_p3 = pnand %p2319_p2, %p2623_p13 }
  0x38   : > { %p2328_p6 = por %p2327_p5, %p2326_p4 }
  0x39   : > { %p2322_p9 = pneg %p2321_p3 }
  0x3b   : > { %p2329_p10 = pnand %p2328_p6, %p2322_p9 }
  0x3d   : > { %2332 = shalt.err (!%p2329_p10)
}
  0x3e   : > { %2072 = dma.hbm_to_vmem [thread:$0]  (!%p2617_p12), %s3013_s1, 16, %s418_s23, [#allocation3]  }
  0x3f   : > { %s2464_s16 = smov [#allocation7]   ;;  %s2465_s24 = smov [#allocation10]  }
  0x40   : > { %s448_s21 = sshll.u32 %s2464_s16, 4  ;;  %s487_s28 = sshll.u32 %s2465_s24, 4  ;;  %s449_s21 = int_to_ptr.vmem [resolvable:$true] %s448_s21  ;;  %s488_s28 = int_to_ptr.vmem [resolvable:$true] %s487_s28 }
  0x41   : > { %s2344_s19 = scalar_lea.vmem %s449_s21, 128  ;;  %p2352_p0 = scmp.lt.s32.totalorder %s449_s21, %s449_s21 }
  0x42   : > { %p2345_p7 = scmp.ne.s32.totalorder %s449_s21, %s2344_s19  ;;  %p2353_p1 = scmp.lt.s32.totalorder %s2344_s19, %s2344_s19 }
  0x44   : > { %p2347_p8 = pnand %p2345_p7, %p2623_p13  ;;  %p2354_p2 = por %p2353_p1, %p2352_p0 }
  0x46   : > { %p2348_p11 = pneg %p2347_p8 }
  0x48   : > { %p2355_p3 = pnand %p2354_p2, %p2348_p11 }
  0x4a   : > { %2358 = shalt.err (!%p2355_p3)
}
  0x4b   : > { %2078 = dma.hbm_to_vmem [thread:$0]  (!%p2617_p12), %s3018_s6, 128, %s449_s21, [#allocation6]  }
  0x4c   : > { %s2370_s23 = scalar_lea.vmem %s488_s28, 16  ;;  %s2377_s17 = scalar_lea.vmem %s488_s28, 32 }
  0x4d   : > { %p2371_p9 = scmp.ne.s32.totalorder %s488_s28, %s2370_s23  ;;  %p2378_p6 = scmp.lt.s32.totalorder %s488_s28, %s488_s28 }
  0x4e   : > { %p2379_p10 = scmp.lt.s32.totalorder %s2377_s17, %s2370_s23 }
  0x4f   : > { %p2373_p4 = pnand %p2371_p9, %p2623_p13 }
  0x50   : > { %p2380_p7 = por %p2379_p10, %p2378_p6 }
  0x51   : > { %p2374_p5 = pneg %p2373_p4 }
  0x53   : > { %p2381_p8 = pnand %p2380_p7, %p2374_p5 }
  0x55   : > { %2384 = shalt.err (!%p2381_p8)
}
  0x56   : > { %2084 = dma.hbm_to_vmem [thread:$0]  (!%p2617_p12), %s3025_s13, 16, %s488_s28, [#allocation9]  }
  0x57   : > { %p3052_p11 = scmp.ne.s32.totalorder %s3049_s18, 0 }
  0x58   : > { %p3053_p0 = scmp.eq.s32.totalorder (!%p3052_p11), %s2581_s25, 0 }
  0x59   : > { %513 = sbr.rel (%p3052_p11) target bundleno = 3178 (0xc6a), region = 84 }
  0x5e   : > { %2428 = dma.done.wait (%p3053_p0), [#allocation3], 16   ;;  %p3054_p13 = pmov %p3053_p0 }
  0x5f   : > { %p3055_p1 = pmov %p3053_p0 }
  0x60   : > { %2430 = vsyncadd (%p3054_p13), [#allocation3], 4294967280 }
  0x61   : > { %2432 = dma.done.wait (%p3055_p1), [#allocation6], 160   ;;  %p3056_p2 = pmov %p3053_p0 }
  0x62   : > { %p3057_p3 = pmov %p3053_p0 }
  0x63   : > { %2434 = vsyncadd (%p3056_p2), [#allocation6], 4294967136 }
  0x64   : > { %2436 = dma.done.wait (%p3057_p3), [#allocation9], 528   ;;  %p3058_p12 = pmov %p3053_p0 }
  0x65   : > { %p578_p9 = scmp.lt.s32.totalorder %s2581_s25, 1  ;;  %s3059_s24 = sld [smem:[#allocation22_spill]]  ;;  %vm686_vm0 = vcmask 523264   ;;  %v2149_v7 = vld [vmem:[%s3014_s2 + $0x18] sm:$0xff]   ;;  %v2466_v8 = vmov 0.0   ;;  %vm2467_vm1 = vmmov 0  }
  0x66   : > { %2438 = vsyncadd (%p3058_p12), [#allocation9], 4294966768  ;;  %1989 = vmatprep.subr.bf16.mxu1 %v2466_v8  ;;  %1997 = vmatprep.mubr.msk.bf16.mxu1 %vm2467_vm1, %v2466_v8  ;;  %v2150_v9 = vld [vmem:[%s3014_s2 + $0x10] sm:$0xff]   ;;  %v2151_v10 = vld [vmem:[%s3014_s2 + $0x8] sm:$0xff]   ;;  %s2468_s23 = smov 32   ;;  %s2469_s17 = smov 96  }
  0x67   : > { %s579_s27 = scalar_select %p578_p9, %s2581_s25, 1  ;;  %1990 = vmatpush3.bf16.msra.mxu1 %v2149_v7  ;;  %v2152_v11 = vld [vmem:[%s3014_s2] sm:$0xff]   ;;  %v2153_v19 = vld [vmem:[%s3015_s3 + $0x18] sm:$0xff]   ;;  %v2154_v21 = vld [vmem:[%s3015_s3 + $0x10] sm:$0xff]   ;;  %vm850_vm2 = vcmask 130048   ;;  %vm855_vm3 = vcmask 261120  }
  0x68   : > { %1991 = vmatprep.subr.bf16.mxu1 %v2466_v8  ;;  %v1859_v16 = vld [vmem:[#allocation2] ss:$0 sm:$0xff]  ;;  %v2155_v22 = vld [vmem:[%s3015_s3 + $0x8] sm:$0xff]   ;;  %s2470_s30 = smov 64   ;;  %s2471_s16 = smov 16   ;;  %v609_v62 = vld [vmem:[#allocation8 + $0x8] sm:$0xff] }
  0x69   : > { %s1858_s18 = sshll.u32 %s579_s27, 3  ;;  %v2156_v23 = vld [vmem:[%s3015_s3] sm:$0xff]   ;;  %s2472_s27 = smov 112   ;;  %v608_v49 = vld [vmem:[#allocation8] sm:$0xff]  ;;  %vm865_vm4 = vcmask 253952   ;;  %vm1055_vm5 = vcmask 64512  }
  0x6a   : > { %v603_v44 = vld [vmem:[#allocation7] sm:$0xff]  ;;  %v606_v7 = vld [vmem:[%s3019_s7 + $0x10] sm:$0xff]  ;;  %vm1172_vm6 = vcmask 1043456   ;;  %vm1267_vm7 = vcmask 785408   ;;  %p3061_p5 = scmp.ne.s32.totalorder %s3046_s0, 0 }
  0x6b   : > { %s581_s28 = scalar_lea.vmem %s3059_s24, %s1858_s18  ;;  %1992 = vmatpush3.bf16.msra.mxu1 %v2150_v9  ;;  %v602_v46 = vld [vmem:[%s3017_s5] sm:$0xff]  ;;  %v605_v61 = vld [vmem:[%s3019_s7 + $0x8] sm:$0xff] }
  0x6c   : > { %v2681_v0 = vld [vmem:[%s581_s28] sm:$0xff]  ;;  %1993 = vmatprep.subr.bf16.mxu1 %v2466_v8  ;;  %s1921_s28 = sshll.u32 %s2581_s25, 7  ;;  %s2474_s25 = smov [#allocation11]  }
  0x6d   : > { %v687_v1 = vsel %vm686_vm0, %v2681_v0, 0.0  ;;  %v604_v52 = vld [vmem:[%s3019_s7] sm:$0xff]  ;;  %s2389_s24 = sshll.u32 %s2474_s25, 4  ;;  %s2390_s24 = int_to_ptr.vmem [resolvable:$false] %s2389_s24 }
  0x6e   : > { %688 = vadd.xlane.f32.xlu0 %v687_v1  ;;  %v610_v9 = vld [vmem:[#allocation8 + $0x10] sm:$0xff] }
  0x6f   : > { %1994 = vmatpush3.bf16.msra.mxu1 %v2151_v10 }
  0x70   : > { %1995 = vmatprep.subr.bf16.mxu1 %v2466_v8 }
  0x73   : > { %1996 = vmatpush3.bf16.msra.mxu1 %v2152_v11 }
  0x74   : > { %2001 = vmatprep.subr.bf16.mxu1 %v2466_v8 }
  0xf7   : > { %v689_v2 = vpop.xlane.xlu0 %688 }
  0xf8   : > { %v691_v3 = vmul.f32 0.015625, %v689_v2 }
  0xfa   : > { %v692_v4 = vsub.f32 %v2681_v0, %v691_v3 }
  0xfc   : > { %v693_v5 = vmul.f32 %v692_v4, %v692_v4 }
  0xfe   : > { %v694_v6 = vsel %vm686_vm0, %v693_v5, 0.0 }
  0xff   : > { %695 = vadd.xlane.f32.xlu0 %v694_v6 }
 0x188   : > { %v696_v12 = vpop.xlane.xlu0 %695 }
 0x189   : > { %v697_v13 = vmul.f32 0.015625, %v696_v12  ;;  %v607_v12 = vld [vmem:[%s3019_s7 + $0x18] sm:$0xff] }
 0x18b   : > { %v698_v14 = vadd.f32 1e-05, %v697_v13 }
 0x18d   : > { %2205 = vrsqrt.f32 %v698_v14  ;;  %v611_v14 = vld [vmem:[#allocation8 + $0x18] sm:$0xff] }
 0x19a   : > { %v2206_v15 = vpop.eup %2205 }
 0x19b   : > { %v700_v17 = vmul.f32 %v2206_v15, %v692_v4 }
 0x19d   : > { %v707_v18 = vmul.f32 %v1859_v16, %v700_v17 }
 0x19f   : > { %v708_v20 = vpack.c.bf16 %v707_v18, %v707_v18 }
 0x1a1   : > { %1998 = vmatmul.mubr.msk.bf16.vlgmr.msra.gmra.mxu1 %vm686_vm0, %v708_v20 }
 0x1a2   : > { %2002 = vmatpush3.bf16.msra.mxu1 %v2153_v19  ;;  %2009 = vmatprep.mubr.msk.bf16.mxu1 %vm2467_vm1, %v2466_v8 }
 0x1a3   : > { %2003 = vmatprep.subr.bf16.mxu1 %v2466_v8 }
 0x1a6   : > { %2004 = vmatpush3.bf16.msra.mxu1 %v2154_v21 }
 0x1a7   : > { %2005 = vmatprep.subr.bf16.mxu1 %v2466_v8 }
 0x1aa   : > { %2006 = vmatpush3.bf16.msra.mxu1 %v2155_v22 }
 0x1ab   : > { %2007 = vmatprep.subr.bf16.mxu1 %v2466_v8 }
 0x1ae   : > { %2008 = vmatpush3.bf16.msra.mxu1 %v2156_v23 }
 0x1b1   : > { %2010 = vmatmul.mubr.msk.bf16.vlgmr.msra.gmra.mxu1 %vm686_vm0, %v708_v20  ;;  %v2760_v20 = vld [vmem:[#allocation5] sm:$0x3] }
 0x261   : > { %v770_v24 = vpop.f32.mrf.mxu1 }
 0x262   : > { %880 = vrot.lane.b32.xlu0 %v770_v24, %s2468_s23  ;;  %874 = vrot.lane.b32.xlu1 %v770_v24, %s2469_s17  ;;  %v887_v28 = vsub.f32 0.0, %v770_v24  ;;  %v883_v55 = vmul.f32 %v770_v24, %v604_v52 }
 0x263   : > { %v1999_v25 = vpop.f32.mrf.mxu1 }
 0x265   : > { %v773_v26 = vpop.f32.mrf.mxu1 }
 0x266   : > { %877 = vrot.lane.b32.xlu1 %v770_v24, %s2470_s30  ;;  %v864_v26 = vmul.f32 %v2760_v20, %v2760_v20 }
 0x267   : > { %v2000_v27 = vpop.f32.mrf.mxu1 }
 0x26a   : > { %907 = vrot.lane.b32.xlu1 %v770_v24, %s2471_s16 }
 0x26e   : > { %895 = vrot.lane.b32.xlu1 %v887_v28, %s2472_s27 }
 0x271   : > { %v2728_v29 = vpop.f32.mrf.mxu1 }
 0x272   : > { %847 = vrot.lane.b32.xlu1 %v2728_v29, %s2471_s16  ;;  %v841_v31 = vsub.f32 0.0, %v2728_v29  ;;  %v840_v48 = vmul.f32 %v2728_v29, %v602_v46 }
 0x273   : > { %v2011_v30 = vpop.f32.mrf.mxu1 }
 0x275   : > { %v837_v32 = vpop.f32.mrf.mxu1 }
 0x276   : > { %843 = vrot.lane.b32.xlu1 %v841_v31, %s2472_s27  ;;  %v866_v31 = vsel %vm865_vm4, %v864_v26, 0.0 }
 0x277   : > { %v2012_v33 = vpop.f32.mrf.mxu1 }
 0x2d4   : > { %v875_v34 = vpop.permute.xlu1 %874  ;;  %v881_v36 = vpop.permute.xlu0 %880 }
 0x2d5   : > { %909 = vrot.lane.b32.xlu1 %v875_v34, %s2471_s16  ;;  %v888_v35 = vsub.f32 0.0, %v875_v34  ;;  %v890_v39 = vsub.f32 0.0, %v881_v36  ;;  %v884_v2 = vmul.f32 %v875_v34, %v605_v61  ;;  %v886_v21 = vmul.f32 %v881_v36, %v607_v12 }
 0x2d8   : > { %v878_v37 = vpop.permute.xlu1 %877 }
 0x2d9   : > { %v889_v38 = vsub.f32 0.0, %v878_v37  ;;  %897 = vrot.lane.b32.xlu1 %v888_v35, %s2472_s27  ;;  %v885_v15 = vmul.f32 %v878_v37, %v606_v7 }
 0x2db   : > { %899 = vrot.lane.b32.xlu0 %v889_v38, %s2472_s27 }
 0x2dc   : > { %v908_v40 = vpop.permute.xlu1 %907 }
 0x2dd   : > { %901 = vrot.lane.b32.xlu1 %v890_v39, %s2472_s27  ;;  %s3060_s27 = sld [smem:[#allocation23_spill]] }
 0x2df   : > { %911 = vrot.lane.b32.xlu0 %v878_v37, %s2471_s16 }
 0x2e0   : > { %v896_v41 = vpop.permute.xlu1 %895 }
 0x2e1   : > { %913 = vrot.lane.b32.xlu1 %v881_v36, %s2471_s16  ;;  %v919_v50 = vsel %vm850_vm2, %v896_v41, %v908_v40 }
 0x2e2   : > { %v923_v53 = vmul.f32 %v919_v50, %v608_v49 }
 0x2e3   : > { %s2976_s18 = scalar_lea.hbm %s3060_s27, %s1921_s28 }
 0x2e4   : > { %v848_v42 = vpop.permute.xlu1 %847  ;;  %v2741_v56 = vadd.f32 %v923_v53, %v883_v55  ;;  %v1027_v53 = vlaneseq }
 0x2e6   : > { %v931_v58 = vmul.f32 %v2741_v56, %v2741_v56 }
 0x2e8   : > { %v844_v43 = vpop.permute.xlu1 %843  ;;  %v935_v59 = vsel %vm855_vm3, %v931_v58, 0.0 }
 0x2e9   : > { %v851_v45 = vsel %vm850_vm2, %v844_v43, %v848_v42 }
 0x2ea   : > { %v852_v47 = vmul.f32 %v851_v45, %v603_v44 }
 0x2ec   : > { %v853_v51 = vadd.f32 %v852_v47, %v840_v48 }
 0x2ee   : > { %v854_v54 = vmul.f32 %v853_v51, %v853_v51 }
 0x2f0   : > { %v856_v57 = vsel %vm855_vm3, %v854_v54, 0.0 }
 0x2fe   : > { %857 = vadd.xlane.f32.xlu0 %v856_v57 }
 0x305   : > { %936 = vadd.xlane.f32.xlu1 %v935_v59  ;;  %v2770_v59 = vshrl.u32 %v1027_v53, 7 }
 0x347   : > { %v910_v60 = vpop.permute.xlu1 %909 }
 0x34b   : > { %v898_v63 = vpop.permute.xlu1 %897 }
 0x34c   : > { %v920_v1 = vsel %vm850_vm2, %v898_v63, %v910_v60 }
 0x34d   : > { %v924_v3 = vmul.f32 %v920_v1, %v609_v62  ;;  %v900_v4 = vpop.permute.xlu0 %899 }
 0x34f   : > { %v902_v5 = vpop.permute.xlu1 %901  ;;  %v928_v6 = vadd.f32 %v924_v3, %v884_v2 }
 0x351   : > { %v912_v10 = vpop.permute.xlu0 %911  ;;  %v932_v11 = vmul.f32 %v928_v6, %v928_v6 }
 0x352   : > { %v921_v13 = vsel %vm850_vm2, %v900_v4, %v912_v10 }
 0x353   : > { %v925_v16 = vmul.f32 %v921_v13, %v610_v9  ;;  %v914_v17 = vpop.permute.xlu1 %913  ;;  %v938_v18 = vsel %vm855_vm3, %v932_v11, 0.0 }
 0x354   : > { %v922_v19 = vsel %vm850_vm2, %v902_v5, %v914_v17  ;;  %939 = vadd.xlane.f32.xlu0 %v938_v18  ;;  %v1940_v17 = vld [vmem:[%s3021_s9 + $0x8] sm:$0xff]  }
 0x355   : > { %v926_v22 = vmul.f32 %v922_v19, %v611_v14  ;;  %v929_v23 = vadd.f32 %v925_v16, %v885_v15  ;;  %v1925_v16 = vld [vmem:[%s3021_s9] sm:$0xff]  }
 0x356   : > { %v1926_v18 = vunpack.c.l.bf16 %v1925_v16 }
 0x357   : > { %v933_v24 = vmul.f32 %v929_v23, %v929_v23  ;;  %v930_v25 = vadd.f32 %v926_v22, %v886_v21  ;;  %v1930_v21 = vunpack.c.l.bf16 %v1940_v17 }
 0x359   : > { %v941_v27 = vsel %vm855_vm3, %v933_v24, 0.0  ;;  %v934_v28 = vmul.f32 %v930_v25, %v930_v25  ;;  %v1927_v24 = vunpack.c.h.bf16 %v1925_v16 }
 0x35a   : > { %942 = vadd.xlane.f32.xlu0 %v941_v27  ;;  %v1931_v27 = vunpack.c.h.bf16 %v1940_v17 }
 0x35b   : > { %v944_v30 = vsel %vm855_vm3, %v934_v28, 0.0 }
 0x35c   : > { %945 = vadd.xlane.f32.xlu1 %v944_v30 }
 0x35e   : > { %867 = vadd.xlane.f32.xlu0 %v866_v31 }
 0x387   : > { %v858_v32 = vpop.xlane.xlu0 %857 }
 0x388   : > { %v859_v33 = vmax.f32 %v858_v32, 1e-24 }
 0x38a   : > { %2207 = vrsqrt.f32 %v859_v33 }
 0x38e   : > { %v937_v39 = vpop.xlane.xlu1 %936 }
 0x38f   : > { %v947_v40 = vmax.f32 %v937_v39, 1e-24 }
 0x391   : > { %2209 = vrsqrt.f32 %v947_v40 }
 0x397   : > { %v2208_v34 = vpop.eup %2207 }
 0x398   : > { %v861_v35 = vmul.f32 %v2208_v34, %v853_v51 }
 0x39a   : > { %v862_v36 = vmul.f32 4.0, %v861_v35 }
 0x39c   : > { %v863_v37 = vpack.c.bf16 %v862_v36, %v862_v36  ;;  %v2473_v36 = vmov 0  }
 0x39d   : > { %2147 = vset.pattern.permute.xlu1 %v2473_v36  ;;  %2148 = vset.pattern.permute.xlu0 %v2473_v36 }
 0x39e   : > { %2045 = vmatprep.subr.msk.bf16.mxu0 %vm855_vm3, %v863_v37  ;;  %v976_v38 = vsel %vm855_vm3, %v863_v37, 0  ;;  %v2210_v49 = vpop.eup %2209 }
 0x39f   : > { %2014 = vmatpush3.bf16.xpose.msra.mxu0 %v976_v38  ;;  %v955_v50 = vmul.f32 %v2210_v49, %v2741_v56  ;;  %v1029_v56 = vsub.s32 0, %v2770_v59  ;;  %v1933_v38 = vld [vmem:[%s3022_s10] sm:$0xff]  }
 0x3a0   : > { %2025 = vmatprep.subr.bf16.mxu0 %v2466_v8  ;;  %v1934_v40 = vunpack.c.l.bf16 %v1933_v38 }
 0x3a1   : > { %v959_v54 = vmul.f32 4.0, %v955_v50 }
 0x3dd   : > { %v940_v41 = vpop.xlane.xlu0 %939 }
 0x3de   : > { %v948_v42 = vmax.f32 %v940_v41, 1e-24  ;;  %v1941_v41 = vld [vmem:[%s3022_s10 + $0x8] sm:$0xff]  }
 0x3df   : > { %v1939_v50 = vunpack.c.h.bf16 %v1941_v41 }
 0x3e0   : > { %2211 = vrsqrt.f32 %v948_v42 }
 0x3e3   : > { %v943_v43 = vpop.xlane.xlu0 %942 }
 0x3e4   : > { %v949_v44 = vmax.f32 %v943_v43, 1e-24  ;;  %v1935_v43 = vunpack.c.h.bf16 %v1933_v38 }
 0x3e5   : > { %v946_v45 = vpop.xlane.xlu1 %945 }
 0x3e6   : > { %2213 = vrsqrt.f32 %v949_v44  ;;  %v950_v46 = vmax.f32 %v946_v45, 1e-24  ;;  %v1938_v45 = vunpack.c.l.bf16 %v1941_v41 }
 0x3e7   : > { %v868_v47 = vpop.xlane.xlu0 %867 }
 0x3e8   : > { %2215 = vrsqrt.f32 %v950_v46  ;;  %v869_v48 = vmax.f32 %v868_v47, 1e-24 }
 0x3ea   : > { %2217 = vrsqrt.f32 %v869_v48 }
 0x3ed   : > { %v2212_v51 = vpop.eup %2211 }
 0x3ee   : > { %v956_v52 = vmul.f32 %v2212_v51, %v928_v6 }
 0x3f0   : > { %v960_v55 = vmul.f32 4.0, %v956_v52 }
 0x3f2   : > { %v963_v57 = vpack.c.bf16 %v960_v55, %v959_v54 }
 0x3f3   : > { %v2214_v58 = vpop.eup %2213 }
 0x3f4   : > { %2015 = vmatprep.mubr.msk.bf16.mxu0 %vm855_vm3, %v963_v57  ;;  %v957_v60 = vmul.f32 %v2214_v58, %v929_v23 }
 0x3f5   : > { %v2216_v61 = vpop.eup %2215 }
 0x3f6   : > { %v958_v62 = vmul.f32 %v2216_v61, %v930_v25  ;;  %v961_v1 = vmul.f32 4.0, %v957_v60 }
 0x3f7   : > { %v2218_v63 = vpop.eup %2217 }
 0x3f8   : > { %v962_v2 = vmul.f32 4.0, %v958_v62  ;;  %v871_v3 = vmul.f32 %v2218_v63, %v2760_v20 }
 0x3fa   : > { %v964_v4 = vpack.c.bf16 %v962_v2, %v961_v1  ;;  %v872_v5 = vmul.f32 4.0, %v871_v3 }
 0x3fc   : > { %2016 = vmatmul.mubr.msk.bf16.vlgmr.msra.gmra.mxu0 %vm855_vm3, %v964_v4  ;;  %v1030_v6 = vrot.slane %v872_v5, %v1029_v56 }
 0x3fd   : > { %2041 = vmatprep.mubr.msk.bf16.mxu0 %vm2467_vm1, %v2466_v8 }
 0x3fe   : > { %v1032_v7 = vmul.f32 %v1030_v6, %v960_v55  ;;  %v1031_v9 = vmul.f32 %v1030_v6, %v959_v54  ;;  %v1034_v12 = vmul.f32 %v1030_v6, %v962_v2  ;;  %v1033_v13 = vmul.f32 %v1030_v6, %v961_v1 }
 0x3ff   : > { %v1134_v2 = vpack.c.bf16 %v2728_v29, %v2728_v29 }
 0x400   : > { %v1038_v10 = vsel %vm855_vm3, %v1032_v7, 0.0  ;;  %v1035_v11 = vsel %vm855_vm3, %v1031_v9, 0.0  ;;  %v1044_v14 = vsel %vm855_vm3, %v1034_v12, 0.0  ;;  %v1041_v15 = vsel %vm855_vm3, %v1033_v13, 0.0 }
 0x401   : > { %1039 = vadd.xlane.f32.xlu0 %v1038_v10  ;;  %1036 = vadd.xlane.f32.xlu1 %v1035_v11 }
 0x405   : > { %1045 = vadd.xlane.f32.xlu0 %v1044_v14  ;;  %1042 = vadd.xlane.f32.xlu1 %v1041_v15 }
 0x48a   : > { %v1037_v37 = vpop.xlane.xlu1 %1036  ;;  %v1040_v39 = vpop.xlane.xlu0 %1039 }
 0x48b   : > { %v2800_v44 = vadd.f32 %v1934_v40, %v1037_v37  ;;  %v1052_v49 = vadd.f32 %v1935_v43, %v1040_v39 }
 0x48e   : > { %v1043_v42 = vpop.xlane.xlu1 %1042  ;;  %v1046_v46 = vpop.xlane.xlu0 %1045 }
 0x48f   : > { %v1053_v51 = vadd.f32 %v1938_v45, %v1043_v42  ;;  %v1054_v58 = vadd.f32 %v1939_v50, %v1046_v46  ;;  %v2158_v50 = vld [vmem:[%s3023_s11 + $0x30] sm:$0xff]  }
 0x4bc   : > { %v2017_v19 = vpop.f32.mrf.mxu0 }
 0x4bd   : > { %v1021_v26 = vadd.f32 %v2017_v19, %v1930_v21 }
 0x4be   : > { %v1012_v22 = vpop.f32.mrf.mxu0 }
 0x4bf   : > { %v1013_v23 = vadd.f32 %v1926_v18, %v1012_v22  ;;  %v1062_v34 = vsel %vm1055_vm5, %v1021_v26, -inf }
 0x4c0   : > { %v2018_v25 = vpop.f32.mrf.mxu0 }
 0x4c1   : > { %v1056_v28 = vsel %vm1055_vm5, %v1013_v23, -inf  ;;  %v1024_v32 = vadd.f32 %v2018_v25, %v1931_v27 }
 0x4c2   : > { %v1015_v30 = vpop.f32.mrf.mxu0  ;;  %1057 = vmax.xlane.f32.xlu1 %v1056_v28 }
 0x4c3   : > { %v1016_v31 = vadd.f32 %v1927_v24, %v1015_v30  ;;  %v1065_v35 = vsel %vm1055_vm5, %v1024_v32, -inf }
 0x4c5   : > { %v1059_v33 = vsel %vm1055_vm5, %v1016_v31, -inf }
 0x4c6   : > { %1060 = vmax.xlane.f32.xlu0 %v1059_v33  ;;  %1063 = vmax.xlane.f32.xlu1 %v1062_v34 }
 0x4ca   : > { %1066 = vmax.xlane.f32.xlu0 %v1065_v35 }
 0x54b   : > { %v1058_v47 = vpop.xlane.xlu1 %1057 }
 0x54c   : > { %v2803_v48 = vmax.f32 %v1058_v47, %v2800_v44 }
 0x54e   : > { %v1104_v52 = vsub.f32 %v2800_v44, %v2803_v48  ;;  %1074 = vperm.xlu1 %2147, %v2803_v48   ;;  %v2157_v48 = vld [vmem:[%s3023_s11 + $0x38] sm:$0xff]  }
 0x54f   : > { %v1061_v53 = vpop.xlane.xlu0 %1060  ;;  %v1064_v54 = vpop.xlane.xlu1 %1063  ;;  %2026 = vmatpush3.bf16.msra.mxu0 %v2157_v48 }
 0x550   : > { %v1069_v55 = vmax.f32 %v1061_v53, %v1052_v49  ;;  %v1070_v57 = vmax.f32 %v1064_v54, %v1053_v51  ;;  %v1108_v34 = vmul.f32 1.442695, %v1104_v52  ;;  %2027 = vmatprep.subr.bf16.mxu0 %v2466_v8  ;;  %v2160_v52 = vld [vmem:[%s3023_s11 + $0x20] sm:$0xff]   ;;  %v2161_v53 = vld [vmem:[%s3023_s11 + $0x18] sm:$0xff]   ;;  %v2162_v54 = vld [vmem:[%s3023_s11 + $0x10] sm:$0xff]  }
 0x552   : > { %v1105_v60 = vsub.f32 %v1052_v49, %v1069_v55  ;;  %v1106_v61 = vsub.f32 %v1053_v51, %v1070_v57  ;;  %1079 = vperm.xlu0 %2148, %v1069_v55   ;;  %1084 = vperm.xlu1 %2147, %v1070_v57   ;;  %v2159_v51 = vld [vmem:[%s3023_s11 + $0x28] sm:$0xff]  }
 0x553   : > { %v1067_v62 = vpop.xlane.xlu0 %1066  ;;  %2028 = vmatpush3.bf16.msra.mxu0 %v2158_v50 }
 0x554   : > { %v1071_v63 = vmax.f32 %v1067_v62, %v1054_v58  ;;  %v1110_v27 = vmul.f32 1.442695, %v1105_v60  ;;  %2029 = vmatprep.subr.bf16.mxu0 %v2466_v8  ;;  %v1157_v60 = vsub.s32 1, %v2770_v59 }
 0x556   : > { %v1107_v1 = vsub.f32 %v1054_v58, %v1071_v63  ;;  %1089 = vperm.xlu1 %2147, %v1071_v63   ;;  %v2163_v58 = vld [vmem:[%s3023_s11 + $0x8] sm:$0xff]   ;;  %v2164_v63 = vld [vmem:[%s3023_s11] sm:$0xff]  }
 0x557   : > { %2030 = vmatpush3.bf16.msra.mxu0 %v2159_v51 }
 0x558   : > { %v1114_v30 = vmul.f32 1.442695, %v1107_v1  ;;  %2031 = vmatprep.subr.bf16.mxu0 %v2466_v8  ;;  %v1158_v1 = vrot.slane %v2760_v20, %v1157_v60  ;;  %v2174_v60 = vld [vmem:[%s3026_s14] ss:$16 sps:$4 sm:$0xff]  }
 0x55a   : > { %1164 = vrot.lane.b32.xlu1 %v1134_v2, %s2469_s17 }
 0x55b   : > { %2032 = vmatpush3.bf16.msra.mxu0 %v2160_v52  ;;  %v2165_v52 = vld [vmem:[%s3026_s14 + $0x60] ss:$16 sps:$4 sm:$0xff]  }
 0x55c   : > { %2033 = vmatprep.subr.bf16.mxu0 %v2466_v8 }
 0x55f   : > { %2034 = vmatpush3.bf16.msra.mxu0 %v2161_v53  ;;  %v2170_v53 = vld [vmem:[%s3026_s14 + $0x44] ss:$16 sps:$4 sm:$0xff]  }
 0x560   : > { %2035 = vmatprep.subr.bf16.mxu0 %v2466_v8 }
 0x563   : > { %2036 = vmatpush3.bf16.msra.mxu0 %v2162_v54  ;;  %v2168_v54 = vld [vmem:[%s3026_s14 + $0x40] ss:$16 sps:$4 sm:$0xff]  }
 0x564   : > { %2037 = vmatprep.subr.bf16.mxu0 %v2466_v8 }
 0x567   : > { %2038 = vmatpush3.bf16.msra.mxu0 %v2163_v58  ;;  %v2176_v58 = vld [vmem:[%s3026_s14 + $0x4] ss:$16 sps:$4 sm:$0xff]  }
 0x568   : > { %2039 = vmatprep.subr.bf16.mxu0 %v2466_v8 }
 0x56b   : > { %2040 = vmatpush3.bf16.msra.mxu0 %v2164_v63 }
 0x5c9   : > { %v1075_v3 = vpop.permute.xlu1 %1074 }
 0x5ca   : > { %v1092_v56 = vsub.f32 %v1013_v23, %v1075_v3 }
 0x5cc   : > { %v1096_v4 = vmul.f32 1.442695, %v1092_v56 }
 0x5cd   : > { %v1080_v5 = vpop.permute.xlu0 %1079  ;;  %v1085_v6 = vpop.permute.xlu1 %1084 }
 0x5ce   : > { %v1093_v7 = vsub.f32 %v1016_v31, %v1080_v5  ;;  %v1094_v9 = vsub.f32 %v1021_v26, %v1085_v6  ;;  %2219 = vpow2.f32 %v1096_v4  ;;  %v1112_v26 = vmul.f32 1.442695, %v1106_v61 }
 0x5d0   : > { %v1098_v10 = vmul.f32 1.442695, %v1093_v7  ;;  %v1100_v11 = vmul.f32 1.442695, %v1094_v9 }
 0x5d1   : > { %v1090_v12 = vpop.permute.xlu1 %1089 }
 0x5d2   : > { %2221 = vpow2.f32 %v1098_v10  ;;  %v1095_v13 = vsub.f32 %v1024_v32, %v1090_v12 }
 0x5d3   : > { %2223 = vpow2.f32 %v1100_v11 }
 0x5d4   : > { %v1102_v14 = vmul.f32 1.442695, %v1095_v13 }
 0x5d5   : > { %v1165_v15 = vpop.permute.xlu1 %1164 }
 0x5d6   : > { %2225 = vpow2.f32 %v1102_v14  ;;  %v1174_v29 = vsel %vm1172_vm6, %v1165_v15, 0  ;;  %2046 = vmatprep.subr.msk.bf16.mxu1 %vm1172_vm6, %v1165_v15 }
 0x5d7   : > { %2020 = vmatpush3.bf16.msra.mxu1 %v1174_v29  ;;  %2227 = vpow2.f32 %v1112_v26 }
 0x5d8   : > { %2229 = vpow2.f32 %v1110_v27 }
 0x5d9   : > { %2231 = vpow2.f32 %v1114_v30 }
 0x5da   : > { %2233 = vpow2.f32 %v1108_v34 }
 0x5db   : > { %v2220_v16 = vpop.eup %2219 }
 0x5dc   : > { %v1116_v28 = vsel %vm1055_vm5, %v2220_v16, 0.0 }
 0x5df   : > { %v2222_v17 = vpop.eup %2221 }
 0x5e0   : > { %v2224_v18 = vpop.eup %2223  ;;  %v1119_v19 = vsel %vm1055_vm5, %v2222_v17, 0.0  ;;  %v1132_v21 = vpack.c.bf16 %v2222_v17, %v2220_v16 }
 0x5e1   : > { %1120 = vadd.xlane.f32.xlu1 %v1119_v19  ;;  %v1122_v22 = vsel %vm1055_vm5, %v2224_v18, 0.0 }
 0x5e2   : > { %1123 = vadd.xlane.f32.xlu0 %v1122_v22  ;;  %2021 = vmatprep.mubr.msk.bf16.mxu1 %vm1055_vm5, %v1132_v21 }
 0x5e3   : > { %v2226_v23 = vpop.eup %2225 }
 0x5e4   : > { %v1125_v24 = vsel %vm1055_vm5, %v2226_v23, 0.0  ;;  %v1133_v25 = vpack.c.bf16 %v2226_v23, %v2224_v18  ;;  %v2228_v31 = vpop.eup %2227 }
 0x5e5   : > { %1126 = vadd.xlane.f32.xlu1 %v1125_v24  ;;  %v2230_v32 = vpop.eup %2229 }
 0x5e6   : > { %2022 = vmatmul.mubr.msk.bf16.vlgmr.msra.gmra.mxu1 %vm1055_vm5, %v1133_v25  ;;  %v2232_v33 = vpop.eup %2231 }
 0x5e7   : > { %1515 = vmatprep.mubr.bf16.mxu1 %v2473_v36  ;;  %v2234_v42 = vpop.eup %2233 }
 0x5e9   : > { %1117 = vadd.xlane.f32.xlu1 %v1116_v28 }
 0x5f8   : > { %1147 = vperm.xlu0 %2148, %v2228_v31  }
 0x5fa   : > { %1142 = vperm.xlu1 %2147, %v2230_v32  }
 0x5fe   : > { %1152 = vperm.xlu1 %2147, %v2232_v33  }
 0x66a   : > { %v1121_v35 = vpop.xlane.xlu1 %1120 }
 0x66b   : > { %v1124_v37 = vpop.xlane.xlu0 %1123  ;;  %v1129_v38 = vadd.f32 %v2230_v32, %v1121_v35 }
 0x66c   : > { %v1130_v39 = vadd.f32 %v2228_v31, %v1124_v37 }
 0x66d   : > { %2235 = vrcp.f32 %v1129_v38 }
 0x66e   : > { %2237 = vrcp.f32 %v1130_v39  ;;  %v1127_v40 = vpop.xlane.xlu1 %1126 }
 0x66f   : > { %v1131_v41 = vadd.f32 %v2232_v33, %v1127_v40 }
 0x671   : > { %2239 = vrcp.f32 %v1131_v41 }
 0x672   : > { %v1118_v43 = vpop.xlane.xlu1 %1117 }
 0x673   : > { %v1128_v45 = vadd.f32 %v2234_v42, %v1118_v43  ;;  %v1148_v2 = vpop.permute.xlu0 %1147 }
 0x674   : > { %v1161_v5 = vmul.f32 %v1158_v1, %v1148_v2 }
 0x675   : > { %2241 = vrcp.f32 %v1128_v45 }
 0x676   : > { %v1143_v61 = vpop.permute.xlu1 %1142 }
 0x677   : > { %v1160_v4 = vmul.f32 %v1158_v1, %v1143_v61  ;;  %v2179_v61 = vld [vmem:[%s3026_s14 + $0x6c] ss:$16 sps:$4 sm:$0xff]  }
 0x67a   : > { %v2236_v46 = vpop.eup %2235  ;;  %v1153_v3 = vpop.permute.xlu1 %1152 }
 0x67b   : > { %v2238_v47 = vpop.eup %2237  ;;  %1236 = vperm.xlu1 %2147, %v2236_v46   ;;  %v1162_v9 = vmul.f32 %v1158_v1, %v1153_v3  ;;  %v1883_v3 = vld [vmem:[#allocation10] ss:$0 sm:$0xff] }
 0x67c   : > { %1241 = vperm.xlu0 %2148, %v2238_v47  }
 0x67e   : > { %v2240_v44 = vpop.eup %2239 }
 0x67f   : > { %1246 = vperm.xlu1 %2147, %v2240_v44  }
 0x680   : > { %1137 = vperm.xlu0 %2148, %v2234_v42   ;;  %v1882_v42 = vld [vmem:[%s3024_s12] ss:$0 sm:$0xff] }
 0x682   : > { %v2242_v49 = vpop.eup %2241 }
 0x683   : > { %1231 = vperm.xlu1 %2147, %v2242_v49  }
 0x6a6   : > { %v2023_v55 = vpop.f32.mrf.mxu1 }
 0x6a7   : > { %v1219_v7 = vadd.f32 %v2023_v55, %v1161_v5  ;;  %v2173_v55 = vld [vmem:[%s3026_s14 + $0x24] ss:$16 sps:$4 sm:$0xff]   ;;  %v2177_v5 = vld [vmem:[%s3026_s14 + $0x68] ss:$16 sps:$4 sm:$0xff]  }
 0x6a8   : > { %v1210_v57 = vpop.f32.mrf.mxu1 }
 0x6aa   : > { %v2024_v62 = vpop.f32.mrf.mxu1 }
 0x6ab   : > { %v1222_v8 = vadd.f32 %v2024_v62, %v1162_v9  ;;  %v2185_v9 = vld [vmem:[%s3026_s14 + $0x2c] ss:$16 sps:$4 sm:$0xff]  }
 0x6ac   : > { %v1213_v56 = vpop.f32.mrf.mxu1 }
 0x6ad   : > { %v1214_v6 = vadd.f32 %v1213_v56, %v1160_v4 }
 0x6f6   : > { %v1237_v59 = vpop.permute.xlu1 %1236 }
 0x6f7   : > { %v1242_v10 = vpop.permute.xlu0 %1241  ;;  %v1250_v11 = vmul.f32 %v1237_v59, %v1214_v6  ;;  %v2180_v59 = vld [vmem:[%s3026_s14 + $0x48] ss:$16 sps:$4 sm:$0xff]  }
 0x6f8   : > { %v1251_v12 = vmul.f32 %v1242_v10, %v1219_v7  ;;  %v2182_v7 = vld [vmem:[%s3026_s14 + $0x4c] ss:$16 sps:$4 sm:$0xff]   ;;  %v2183_v10 = vld [vmem:[%s3026_s14 + $0x28] ss:$16 sps:$4 sm:$0xff]  }
 0x6f9   : > { %1254 = vrot.lane.b32.xlu0 %v1250_v11, %s2468_s23  ;;  %v2188_v11 = vld [vmem:[%s3026_s14 + $0xc] ss:$16 sps:$4 sm:$0xff]   ;;  %s2391_s23 = scalar_lea.vmem %s2390_s24, 256 }
 0x6fa   : > { %1258 = vrot.lane.b32.xlu1 %v1251_v12, %s2470_s30  ;;  %v1247_v13 = vpop.permute.xlu1 %1246  ;;  %v2189_v12 = vld [vmem:[%s3027_s15 + $0x78] sm:$0xff]  }
 0x6fb   : > { %v1252_v20 = vmul.f32 %v1247_v13, %v1222_v8  ;;  %v1138_v14 = vpop.permute.xlu0 %1137  ;;  %v2190_v8 = vld [vmem:[%s3027_s15 + $0x38] sm:$0xff]   ;;  %1967 = vmatprep.subr.bf16.mxu0 %v2189_v12  ;;  %v2191_v13 = vld [vmem:[%s3027_s15 + $0x70] sm:$0xff]  }
 0x6fc   : > { %v1159_v15 = vmul.f32 %v1158_v1, %v1138_v14  ;;  %v2193_v14 = vld [vmem:[%s3027_s15 + $0x68] sm:$0xff]  }
 0x6fd   : > { %1262 = vrot.lane.b32.xlu0 %v1252_v20, %s2469_s17  ;;  %v2192_v20 = vld [vmem:[%s3027_s15 + $0x30] sm:$0xff]   ;;  %s575_s17 = sand.u32 1, %s2449_s22  }
 0x6fe   : > { %v1211_v29 = vadd.f32 %v1210_v57, %v1159_v15  ;;  %v1232_v16 = vpop.permute.xlu1 %1231  ;;  %v2171_v57 = vld [vmem:[%s3026_s14 + $0x20] ss:$16 sps:$4 sm:$0xff]   ;;  %v2194_v15 = vld [vmem:[%s3027_s15 + $0x28] sm:$0xff]   ;;  %s1857_s30 = sshll.u32 %s575_s17, 3  ;;  %s1721_s29 = scalar_lea.sflag [#allocation4], %s575_s17 }
 0x6ff   : > { %s577_s19 = scalar_lea.vmem [#allocation11], %s1857_s30 }
 0x700   : > { %v1249_v17 = vmul.f32 %v1232_v16, %v1211_v29  ;;  %v2195_v29 = vld [vmem:[%s3027_s15 + $0x60] sm:$0xff]   ;;  %s1734_s20 = sshll.u32 %s577_s19, 4  ;;  %s1735_s20 = int_to_ptr.vmem [resolvable:$true] %s1734_s20 }
 0x701   : > { %v2196_v16 = vld [vmem:[%s3027_s15 + $0x20] sm:$0xff]   ;;  %s2385_s21 = scalar_lea.vmem %s1735_s20, 128  ;;  %p2392_p7 = scmp.lt.s32.totalorder %s1735_s20, %s2390_s24 }
 0x702   : > { %p2386_p4 = scmp.ne.s32.totalorder %s1735_s20, %s2385_s21  ;;  %p2393_p8 = scmp.lt.s32.totalorder %s2391_s23, %s2385_s21 }
 0x704   : > { %p2387_p6 = pnand %p2386_p4, %p3061_p5  ;;  %p2394_p11 = por %p2393_p8, %p2392_p7 }
 0x706   : > { %p2388_p10 = pneg %p2387_p6 }
 0x708   : > { %p2395_p0 = pnand %p2394_p11, %p2388_p10 }
 0x76b   : > { %v1255_v18 = vpop.permute.xlu0 %1254 }
 0x76c   : > { %v1259_v19 = vpop.permute.xlu1 %1258  ;;  %v1265_v21 = vsel %vm855_vm3, %v1249_v17, %v1255_v18  ;;  %v2197_v17 = vld [vmem:[%s3027_s15 + $0x58] sm:$0xff]  }
 0x76d   : > { %v1266_v23 = vsel %vm686_vm0, %v1265_v21, %v1259_v19  ;;  %v2198_v18 = vld [vmem:[%s3027_s15 + $0x18] sm:$0xff]   ;;  %v2199_v19 = vld [vmem:[%s3027_s15 + $0x50] sm:$0xff]  }
 0x76e   : > { %v2200_v21 = vld [vmem:[%s3027_s15 + $0x10] sm:$0xff]  }
 0x76f   : > { %v1263_v22 = vpop.permute.xlu0 %1262 }
 0x770   : > { %v1268_v24 = vsel %vm1267_vm7, %v1266_v23, %v1263_v22  ;;  %v2201_v22 = vld [vmem:[%s3027_s15 + $0x48] sm:$0xff]  }
 0x771   : > { %v1269_v25 = vpack.c.bf16 %v1268_v24, %v1268_v24  ;;  %v2202_v23 = vld [vmem:[%s3027_s15 + $0x8] sm:$0xff]   ;;  %v2203_v24 = vld [vmem:[%s3027_s15 + $0x40] sm:$0xff]  }
 0x773   : > { %2042 = vmatmul.mubr.bf16.vlgmr.msra.gmra.mxu0 %v1269_v25  ;;  %v2204_v25 = vld [vmem:[%s3027_s15] sm:$0xff]  }
 0x774   : > { %1968 = vmatpush3.bf16.msra.mxu0 %v2190_v8 }
 0x775   : > { %1969 = vmatprep.subr.bf16.mxu0 %v2191_v13 }
 0x778   : > { %1970 = vmatpush3.bf16.msra.mxu0 %v2192_v20 }
 0x779   : > { %1971 = vmatprep.subr.bf16.mxu0 %v2193_v14 }
 0x77c   : > { %1972 = vmatpush3.bf16.msra.mxu0 %v2194_v15 }
 0x77d   : > { %1973 = vmatprep.subr.bf16.mxu0 %v2195_v29 }
 0x780   : > { %1974 = vmatpush3.bf16.msra.mxu0 %v2196_v16 }
 0x781   : > { %1975 = vmatprep.subr.bf16.mxu0 %v2197_v17 }
 0x784   : > { %1976 = vmatpush3.bf16.msra.mxu0 %v2198_v18 }
 0x785   : > { %1977 = vmatprep.subr.bf16.mxu0 %v2199_v19 }
 0x788   : > { %1978 = vmatpush3.bf16.msra.mxu0 %v2200_v21 }
 0x789   : > { %1979 = vmatprep.subr.bf16.mxu0 %v2201_v22 }
 0x78c   : > { %1980 = vmatpush3.bf16.msra.mxu0 %v2202_v23 }
 0x78d   : > { %1981 = vmatprep.subr.bf16.mxu0 %v2203_v24 }
 0x790   : > { %1982 = vmatpush3.bf16.msra.mxu0 %v2204_v25 }
 0x833   : > { %v1352_v26 = vpop.f32.mrf.mxu0 }
 0x834   : > { %v1358_v27 = vsel %vm686_vm0, %v1352_v26, 0.0 }
 0x835   : > { %1359 = vadd.xlane.f32.xlu1 %v1358_v27  ;;  %v2043_v28 = vpop.f32.mrf.mxu0 }
 0x837   : > { %v1355_v30 = vpop.f32.mrf.mxu0 }
 0x839   : > { %v2044_v31 = vpop.f32.mrf.mxu0 }
 0x8be   : > { %v1360_v32 = vpop.xlane.xlu1 %1359 }
 0x8bf   : > { %v1361_v33 = vmul.f32 0.015625, %v1360_v32 }
 0x8c1   : > { %v1362_v34 = vsub.f32 %v1352_v26, %v1361_v33 }
 0x8c3   : > { %v1363_v35 = vmul.f32 %v1362_v34, %v1362_v34 }
 0x8c5   : > { %v1364_v37 = vsel %vm686_vm0, %v1363_v35, 0.0 }
 0x8c6   : > { %1365 = vadd.xlane.f32.xlu0 %v1364_v37 }
 0x94f   : > { %v1366_v38 = vpop.xlane.xlu0 %1365 }
 0x950   : > { %v1367_v39 = vmul.f32 0.015625, %v1366_v38 }
 0x952   : > { %v1368_v40 = vadd.f32 1e-05, %v1367_v39 }
 0x954   : > { %2243 = vrsqrt.f32 %v1368_v40 }
 0x961   : > { %v2244_v41 = vpop.eup %2243 }
 0x962   : > { %v1370_v43 = vmul.f32 %v2244_v41, %v1362_v34 }
 0x964   : > { %v1377_v45 = vmul.f32 %v1882_v42, %v1370_v43 }
 0x966   : > { %v2865_v46 = vadd.f32 %v1377_v45, %v2681_v0  ;;  %v2167_v0 = vld [vmem:[%s3026_s14 + $0x64] ss:$16 sps:$4 sm:$0xff]  }
 0x967   : > { %1491 = vmatprep.subr.bf16.mxu1 %v2167_v0 }
 0x968   : > { %v1379_v47 = vsel %vm686_vm0, %v2865_v46, 0.0  ;;  %1492 = vmatpush1.bf16.msra.mxu1 %v2165_v52 }
 0x969   : > { %1380 = vadd.xlane.f32.xlu0 %v1379_v47  ;;  %1493 = vmatprep.subr.bf16.mxu1 %v2170_v53 }
 0x96c   : > { %1494 = vmatpush1.bf16.msra.mxu1 %v2168_v54 }
 0x96d   : > { %1495 = vmatprep.subr.bf16.mxu1 %v2173_v55 }
 0x970   : > { %1496 = vmatpush1.bf16.msra.mxu1 %v2171_v57 }
 0x971   : > { %1497 = vmatprep.subr.bf16.mxu1 %v2176_v58 }
 0x974   : > { %1498 = vmatpush1.bf16.msra.mxu1 %v2174_v60 }
 0x975   : > { %1532 = vmatprep.subr.bf16.mxu1 %v2179_v61 }
 0x9f2   : > { %v1381_v44 = vpop.xlane.xlu0 %1380 }
 0x9f3   : > { %v1382_v48 = vmul.f32 0.015625, %v1381_v44 }
 0x9f5   : > { %v1383_v49 = vsub.f32 %v2865_v46, %v1382_v48 }
 0x9f7   : > { %v1384_v50 = vmul.f32 %v1383_v49, %v1383_v49 }
 0x9f9   : > { %v1385_v51 = vsel %vm686_vm0, %v1384_v50, 0.0 }
 0x9fa   : > { %1386 = vadd.xlane.f32.xlu1 %v1385_v51 }
 0xa83   : > { %v1387_v62 = vpop.xlane.xlu1 %1386 }
 0xa84   : > { %v1388_v63 = vmul.f32 0.015625, %v1387_v62 }
 0xa86   : > { %v1389_v1 = vadd.f32 1e-05, %v1388_v63 }
 0xa88   : > { %2245 = vrsqrt.f32 %v1389_v1 }
 0xa95   : > { %v2246_v2 = vpop.eup %2245 }
 0xa96   : > { %v1391_v56 = vmul.f32 %v2246_v2, %v1383_v49 }
 0xa98   : > { %v1398_v4 = vmul.f32 %v1883_v3, %v1391_v56 }
 0xa9a   : > { %v1399_v6 = vpack.c.bf16 %v1398_v4, %v1398_v4 }
 0xa9c   : > { %1900 = vmatmul.mubr.msk.bf16.vlgmr.msra.gmra.mxu1 %vm686_vm0, %v1399_v6 }
 0xa9d   : > { %1533 = vmatpush1.bf16.msra.mxu1 %v2177_v5  ;;  %1556 = vmatprep.mubr.bf16.mxu1 %v2473_v36  ;;  %v2186_v36 = vld [vmem:[%s3026_s14 + $0x8] ss:$16 sps:$4 sm:$0xff]  }
 0xa9e   : > { %1534 = vmatprep.subr.bf16.mxu1 %v2182_v7 }
 0xaa1   : > { %1535 = vmatpush1.bf16.msra.mxu1 %v2180_v59 }
 0xaa2   : > { %1536 = vmatprep.subr.bf16.mxu1 %v2185_v9 }
 0xaa5   : > { %1537 = vmatpush1.bf16.msra.mxu1 %v2183_v10 }
 0xaa6   : > { %1538 = vmatprep.subr.bf16.mxu1 %v2188_v11 }
 0xaa9   : > { %1539 = vmatpush1.bf16.msra.mxu1 %v2186_v36 }
 0xaac   : > { %1901 = vmatmul.mubr.msk.bf16.vlgmr.msra.gmra.mxu1 %vm686_vm0, %v1399_v6 }
 0xb5c   : > { %v1517_v26 = vpop.f32.mrf.mxu1 }
 0xb5e   : > { %v1519_v27 = vpop.f32.mrf.mxu1 }
 0xb60   : > { %v1521_v28 = vpop.f32.mrf.mxu1 }
 0xb62   : > { %v1522_v30 = vpop.f32.mrf.mxu1 }
 0xb6c   : > { %v1558_v31 = vpop.f32.mrf.mxu1 }
 0xb6d   : > { %v1902_v32 = vmul.f32 -1.442695, %v1558_v31 }
 0xb6e   : > { %v1560_v33 = vpop.f32.mrf.mxu1 }
 0xb6f   : > { %2247 = vpow2.f32 %v1902_v32  ;;  %v1903_v34 = vmul.f32 -1.442695, %v1560_v33 }
 0xb70   : > { %v1562_v35 = vpop.f32.mrf.mxu1 }
 0xb71   : > { %2249 = vpow2.f32 %v1903_v34 }
 0xb72   : > { %v1563_v37 = vpop.f32.mrf.mxu1 }
 0xb7c   : > { %v2248_v38 = vpop.eup %2247 }
 0xb7d   : > { %v1571_v39 = vadd.f32 1.0, %v2248_v38 }
 0xb7e   : > { %v2250_v40 = vpop.eup %2249 }
 0xb7f   : > { %2251 = vrcp.f32 %v1571_v39  ;;  %v1572_v41 = vadd.f32 1.0, %v2250_v40 }
 0xb81   : > { %2253 = vrcp.f32 %v1572_v41 }
 0xb8c   : > { %v2252_v42 = vpop.eup %2251 }
 0xb8d   : > { %v1577_v43 = vmul.f32 %v2252_v42, %v1558_v31 }
 0xb8e   : > { %v2254_v45 = vpop.eup %2253 }
 0xb8f   : > { %v1578_v47 = vmul.f32 %v2254_v45, %v1560_v33  ;;  %v1579_v44 = vmul.f32 %v1577_v43, %v1517_v26 }
 0xb91   : > { %v1580_v48 = vmul.f32 %v1578_v47, %v1519_v27  ;;  %v1581_v50 = vpack.c.bf16 %v1579_v44, %v1579_v44 }
 0xb93   : > { %v1582_v49 = vpack.c.bf16 %v1580_v48, %v1580_v48 }
 0xb95   : > { %1711 = vmatprep.mubr.bf16.mxu0 %v1582_v49 }
 0xb96   : > { %1712 = vmatmul.mubr.bf16.vlgmr.msra.gmra.mxu0 %v1581_v50 }
 0xc56   : > { %v1983_v51 = vpop.f32.mrf.mxu0 }
 0xc58   : > { %v1984_v52 = vpop.f32.mrf.mxu0 }
 0xc59   : > { %v1985_v0 = vadd.f32 %v1984_v52, %v1983_v51 }
 0xc5a   : > { %v1986_v53 = vpop.f32.mrf.mxu0 }
 0xc5b   : > { %v1714_v54 = vadd.f32 %v1985_v0, %v2865_v46 }
 0xc5c   : > { %v1987_v55 = vpop.f32.mrf.mxu0 }
 0xc5d   : > { %1719 = vst.msk [vmem:[%s577_s19] sm:$0xff] %vm686_vm0, %v1714_v54 }
 0xc5e   : > { %2398 = shalt.err (!%p2395_p0)
}
 0xc5f   : > { %s2399_s30 = scalar_lea.hbm %s2976_s18, 128  ;;  %s2403_s19 = scalar_lea.hbm %s3060_s27, 256 }
 0xc60   : > { %p2400_p13 = scmp.ne.s32.totalorder %s2976_s18, %s2399_s30  ;;  %p2404_p3 = scmp.lt.s32.totalorder %s2976_s18, %s3060_s27 }
 0xc61   : > { %p2405_p12 = scmp.lt.s32.totalorder %s2403_s19, %s2399_s30 }
 0xc62   : > { %p2401_p1 = pnand %p2400_p13, %p3061_p5 }
 0xc63   : > { %p2406_p9 = por %p2405_p12, %p2404_p3 }
 0xc64   : > { %p2402_p2 = pneg %p2401_p1 }
 0xc66   : > { %p2407_p4 = pnand %p2406_p9, %p2402_p2 }
 0xc68   : > { %2410 = shalt.err (!%p2407_p4)
}
 0xc69   : > { %2067 = dma.vmem_to_hbm [thread:$0]  (%p3061_p5), %s1735_s20, 128, %s2976_s18, %s1721_s29  }
 0xc6a PF: > { %s3062_s21 = sld [smem:[#allocation18_spill]] }
 0xc6b   : > { %s3063_s25 = sld [smem:[#allocation16_spill]] }
 0xc6c   : > { %s3064_s24 = sld [smem:[#allocation21_spill]] }
 0xc70   : > { %p2099_p6 = scmp.ge.s32.totalorder %s3062_s21, 2 }
 0xc71   : > { %s1746_s23 = sand.u32 1, %s3063_s25  }
 0xc72   : > { %p3065_p10 = scmp.ne.s32.totalorder %s3064_s24, 0  ;;  %s1747_s17 = scalar_lea.sflag [#allocation4], %s1746_s23 }
 0xc74   : > { %p2086_p7 = pnand %p2099_p6, %p3065_p10 }
 0xc76   : > { %p2087_p8 = pneg %p2086_p7 }
 0xc78   : > { %2440 = dma.done.wait (%p2087_p8), %s1747_s17, 128  }
 0xc79   : > { %2442 = vsyncadd (%p2087_p8), %s1747_s17, 4294967168  ;;  %s3066_s24 = sld [smem:[#allocation19_spill]]  ;;  %s3069_s21 = smov %s2449_s22 }
 0xc7a   : > { %s3067_s30 = sld [smem:[#allocation17_spill]] }
 0xc7b   : > { %s3068_s23 = sld [smem:[#allocation20_spill]] }
 0xc7f   : > { %p29_p11 = scmp.ge.s32.totalorder %s3066_s24, 4  }
 0xc80   : > { %s3070_s22 = smov %s3067_s30 }
 0xc81   :  { %31 = sbr.rel (!%p29_p11) target bundleno = 9 (0x9), region = 140 }
 0xc86   :  { %1752 = vsyncpa [#allocation3], 1 }
 0xc87   :  { %1754 = vsyncpa [#allocation3 + $0x1], 1 }
 0xc88   :  { %1755 = vsyncpa [#allocation6], 1 }
 0xc89   :  { %1756 = vsyncpa [#allocation9], 1 }
 0xc8a   :  { %1757 = vsyncpa [#allocation4], 1 }
 0xc8b   :  { %1759 = vsyncpa [#allocation4 + $0x1], 1 }

</bundles_post_ra>
